<compile_context>
chip_gen: v5e
topology: v5e:2x2
jax: 0.10.0
libtpu: 0.0.40
codegen_flags: <defaults>
</compile_context>

<pallas_src>
import functools

import jax
import jax.numpy as jnp
from jax.experimental import pallas as pl
from jax.experimental.pallas import tpu as pltpu


# v6e/v7x: True (256-deep MXU).  v5e: set False (keeps 3 per-dy K=3*Cmid dots).
FOLD_3X3_SINGLE_MATMUL = True


def bottleneck_kernel(x_ref, w1_ref, w2_ref, w3_ref, o_ref, *, fold_3x3):
    # x_ref: (1, H, W, Cin) bf16 VMEM block for one batch element.
    _, H, W, Cin = x_ref.shape
    Cmid = w1_ref.shape[1]
    Cout = w3_ref.shape[1]
    HW = H * W
    f32 = jnp.float32
    bf16 = jnp.bfloat16

    # ---- block1: 1x1 conv (bias=False) + ReLU -> (HW, Cmid) f32 ----
    x2d = x_ref[0].reshape(HW, Cin)                      # bf16, no cast needed
    out1 = jnp.maximum(
        jnp.dot(x2d, w1_ref[...], preferred_element_type=f32), 0.0)

    # ---- block2: 3x3 conv, padding=1, stride=1, + ReLU ----
    # Spatial shifts via pltpu.roll (XLU) on the flattened H*W sublane axis;
    # out-of-image taps zeroed with iota masks.  wpos mask is applied BEFORE
    # the dy roll (corner-tap correctness).
    wpos = jax.lax.broadcasted_iota(jnp.int32, (H, W, 1), 1).reshape(HW, 1)
    hpos = jax.lax.broadcasted_iota(jnp.int32, (H, W, 1), 0).reshape(HW, 1)

    left = jnp.where(wpos > 0, pltpu.roll(out1, 1, axis=0), 0.0)            # out1[h, w-1]
    right = jnp.where(wpos < W - 1, pltpu.roll(out1, HW - 1, axis=0), 0.0)  # out1[h, w+1]
    patch = jnp.concatenate([left, out1, right], axis=-1)                   # (HW, 3*Cmid)

    up = jnp.where(hpos > 0, pltpu.roll(patch, W, axis=0), 0.0)             # rows h-1
    down = jnp.where(hpos < H - 1, pltpu.roll(patch, HW - W, axis=0), 0.0)  # rows h+1

    if fold_3x3:
        # All 9 taps in one K=9*Cmid contraction (w2_ref is (9*Cmid, Cmid)).
        patch9 = jnp.concatenate([up, patch, down], axis=-1)                # (HW, 9*Cmid)
        acc = jnp.dot(patch9.astype(bf16), w2_ref[...],
                      preferred_element_type=f32)
    else:
        # v5e path: 3 per-dy dots of K=3*Cmid (w2_ref is (3, 3*Cmid, Cmid)).
        acc = jnp.dot(patch.astype(bf16), w2_ref[1],
                      preferred_element_type=f32)
        acc = acc + jnp.dot(up.astype(bf16), w2_ref[0],
                            preferred_element_type=f32)
        acc = acc + jnp.dot(down.astype(bf16), w2_ref[2],
                            preferred_element_type=f32)
    out2 = jnp.maximum(acc, 0.0).astype(bf16)                               # (HW, Cmid)

    # ---- block3: 1x1 conv (no activation) + identity residual + final ReLU ----
    # NOTE: on v6e/v7x the residual could be folded into this matmul
    # (K = Cmid + Cin still one 256-deep pass); kept as an explicit f32 add.
    out3 = jnp.dot(out2, w3_ref[...], preferred_element_type=f32)           # (HW, Cout) f32
    res = x_ref[0].reshape(HW, Cout).astype(f32)        # Cin == Cout; re-read from VMEM
    o_ref[0] = jnp.maximum(out3 + res, 0.0).reshape(H, W, Cout).astype(o_ref.dtype)


def _bottleneck_pallas_nhwc(x_nhwc, w1, w2, w3, *, fold_3x3=FOLD_3X3_SINGLE_MATMUL):
    """Core fused kernel. x_nhwc: (N, H, W, Cin) bf16. Returns (N, H, W, Cout) f32."""
    N, H, W, Cin = x_nhwc.shape
    Cmid = w1.shape[1]
    Cout = w3.shape[1]
    assert Cout == Cin, "identity residual requires in_chs == out_chs * expansion"

    # Weight prep happens once in the wrapper (constant-folded under jit), not
    # per grid step inside the kernel.
    w1_b = w1.astype(jnp.bfloat16)
    w3_b = w3.astype(jnp.bfloat16)
    if fold_3x3:
        w2_b = w2.reshape(9 * Cmid, Cmid).astype(jnp.bfloat16)      # (ky,kx,cin) major
        w2_spec = pl.BlockSpec((9 * Cmid, Cmid), lambda b: (0, 0))
    else:
        w2_b = w2.reshape(3, 3 * Cmid, Cmid).astype(jnp.bfloat16)
        w2_spec = pl.BlockSpec((3, 3 * Cmid, Cmid), lambda b: (0, 0, 0))

    kernel = functools.partial(bottleneck_kernel, fold_3x3=fold_3x3)

    return pl.pallas_call(
        kernel,
        out_shape=jax.ShapeDtypeStruct((N, H, W, Cout), jnp.float32),
        grid_spec=pltpu.PrefetchScalarGridSpec(
            num_scalar_prefetch=0,
            grid=(N,),
            in_specs=[
                pl.BlockSpec((1, H, W, Cin), lambda b: (b, 0, 0, 0)),
                pl.BlockSpec((Cin, Cmid), lambda b: (0, 0)),
                w2_spec,
                pl.BlockSpec((Cmid, Cout), lambda b: (0, 0)),
            ],
            out_specs=pl.BlockSpec((1, H, W, Cout), lambda b: (b, 0, 0, 0)),
        ),
        compiler_params=pltpu.CompilerParams(
            dimension_semantics=("parallel",),
            # <= ~48 MiB keeps v7x (64 MiB physical) safe; v5e/v6e (128 MiB)
            # can raise this further together with bigger row tiles.
            vmem_limit_bytes=48 * 1024 * 1024),
    )(x_nhwc, w1_b, w2_b, w3_b)


def bottleneck_forward(x_nchw, w1, w2, w3):
    """x_nchw: (N, Cin, H, W) float32. Returns (N, Cout, H, W) float32.

    NOTE: if the surrounding model runs NHWC, call _bottleneck_pallas_nhwc
    directly and drop these two full-HBM transposes; the bf16 cast is fused
    into the layout change here.
    """
    x_nhwc = jnp.transpose(x_nchw, (0, 2, 3, 1)).astype(jnp.bfloat16)   # NHWC bf16
    out_nhwc = _bottleneck_pallas_nhwc(x_nhwc, w1, w2, w3)
    return jnp.transpose(out_nhwc, (0, 3, 1, 2))                        # -> NCHW f32


def bottleneck_reference(x_nchw, w1, w2, w3):
    """Pure-JAX f32 reference (lax convolutions) for validation."""
    x = jnp.transpose(x_nchw, (0, 2, 3, 1))        # NHWC
    dn = ('NHWC', 'HWIO', 'NHWC')
    o1 = jax.nn.relu(jax.lax.conv_general_dilated(
        x, w1.reshape(1, 1, *w1.shape), (1, 1), 'SAME', dimension_numbers=dn))
    o2 = jax.nn.relu(jax.lax.conv_general_dilated(
        o1, w2, (1, 1), 'SAME', dimension_numbers=dn))
    o3 = jax.lax.conv_general_dilated(
        o2, w3.reshape(1, 1, *w3.shape), (1, 1), 'SAME', dimension_numbers=dn)
    out = jax.nn.relu(o3 + x)
    return jnp.transpose(out, (0, 3, 1, 2))


if __name__ == "__main__":
    # Small shapes consistent with the module (in_chs = out_chs * expansion);
    # Cout = 128 keeps output stores lane-dense.
    N, in_chs, out_chs, H, W = 2, 128, 32, 16, 16
    Cin, Cmid, Cout = in_chs, out_chs, out_chs * 4

    kx, k1, k2, k3 = jax.random.split(jax.random.PRNGKey(0), 4)
    x = jax.random.normal(kx, (N, Cin, H, W), jnp.float32)

    # Deterministic, fan-in-scaled synthetic weights (bias=False as in the module).
    w1 = jax.random.normal(k1, (Cin, Cmid), jnp.float32) / jnp.sqrt(float(Cin))
    w2 = jax.random.normal(k2, (3, 3, Cmid, Cmid), jnp.float32) / jnp.sqrt(9.0 * Cmid)
    w3 = jax.random.normal(k3, (Cmid, Cout), jnp.float32) / jnp.sqrt(float(Cmid))

    out = jax.block_until_ready(bottleneck_forward(x, w1, w2, w3))
    ref = jax.block_until_ready(bottleneck_reference(x, w1, w2, w3))

    assert out.shape == (N, Cout, H, W)
    # Kernel uses bf16 inputs/weights with f32 accumulation; tolerance reflects
    # that (a real bug produces O(1) errors, bf16 rounding stays well below 0.1).
    max_err = float(jnp.max(jnp.abs(out - ref)))
    assert max_err < 1e-1, f"mismatch vs reference: max abs err {max_err}"

    print("KERNEL_OK")
</pallas_src>

<mosaic_0001>
module attributes {stable_mosaic.version = 11 : i64} {
  func.func @bottleneck_kernel(%arg0: i32, %arg1: memref<1x16x16x128xbf16, #tpu.memory_space<vmem>>, %arg2: memref<128x32xbf16, #tpu.memory_space<vmem>>, %arg3: memref<288x32xbf16, #tpu.memory_space<vmem>>, %arg4: memref<32x128xbf16, #tpu.memory_space<vmem>>, %arg5: memref<1x16x16x128xf32, #tpu.memory_space<vmem>>) attributes {dimension_semantics = [#tpu.dimension_semantics<parallel>], iteration_bounds = array<i64: 2>, scalar_prefetch = 0 : i64, scratch_operands = 0 : i64, tpu.core_type = #tpu.core_type<tc>, window_params = [{transform_indices = @transform_0, window_bounds = array<i64: 1, 16, 16, 128>}, {pipeline_mode = #tpu.pipeline_mode<synchronous>, transform_indices = @transform_1, window_bounds = array<i64: 128, 32>}, {pipeline_mode = #tpu.pipeline_mode<synchronous>, transform_indices = @transform_2, window_bounds = array<i64: 288, 32>}, {pipeline_mode = #tpu.pipeline_mode<synchronous>, transform_indices = @transform_3, window_bounds = array<i64: 32, 128>}, {transform_indices = @transform_4, window_bounds = array<i64: 1, 16, 16, 128>}]} {
    %c0 = arith.constant 0 : index
    %c0_0 = arith.constant 0 : index
    %c0_1 = arith.constant 0 : index
    %c0_2 = arith.constant 0 : index
    %0 = vector.load %arg1[%c0, %c0_0, %c0_1, %c0_2] : memref<1x16x16x128xbf16, #tpu.memory_space<vmem>>, vector<1x16x16x128xbf16>
    %1 = vector.shape_cast %0 : vector<1x16x16x128xbf16> to vector<16x16x128xbf16>
    %2 = vector.shape_cast %1 : vector<16x16x128xbf16> to vector<256x128xbf16>
    %c0_3 = arith.constant 0 : index
    %c0_4 = arith.constant 0 : index
    %3 = vector.load %arg2[%c0_3, %c0_4] : memref<128x32xbf16, #tpu.memory_space<vmem>>, vector<128x32xbf16>
    %cst = arith.constant dense<0.000000e+00> : vector<256x32xf32>
    %4 = tpu.matmul %2, %3, %cst {dimension_numbers = #tpu.dot_dimension_numbers<[1], [0], [0], [1], [0, 0, 1, 1], [], []>} : vector<256x128xbf16>, vector<128x32xbf16>, vector<256x32xf32> -> vector<256x32xf32>
    %cst_5 = arith.constant 0.000000e+00 : f32
    %5 = vector.broadcast %cst_5 : f32 to vector<256x32xf32>
    %6 = arith.maximumf %4, %5 : vector<256x32xf32>
    %7 = tpu.iota {dimensions = array<i32: 1>} : vector<16x16x1xi32>
    %8 = vector.shape_cast %7 : vector<16x16x1xi32> to vector<256x1xi32>
    %9 = tpu.iota {dimensions = array<i32: 0>} : vector<16x16x1xi32>
    %10 = vector.shape_cast %9 : vector<16x16x1xi32> to vector<256x1xi32>
    %c0_i32 = arith.constant 0 : i32
    %11 = vector.broadcast %c0_i32 : i32 to vector<256x1xi32>
    %12 = arith.cmpi sgt, %8, %11 : vector<256x1xi32>
    %c1_i32 = arith.constant 1 : i32
    %13 = tpu.dynamic_rotate %6 by %c1_i32 dim 0 : vector<256x32xf32>, i32 -> vector<256x32xf32>
    %cst_6 = arith.constant 0.000000e+00 : f32
    %14 = vector.shape_cast %12 : vector<256x1xi1> to vector<256x1xi1>
    %15 = vector.broadcast %14 : vector<256x1xi1> to vector<256x32xi1>
    %16 = vector.broadcast %cst_6 : f32 to vector<256x32xf32>
    %17 = arith.select %15, %13, %16 : vector<256x32xi1>, vector<256x32xf32>
    %c15_i32 = arith.constant 15 : i32
    %18 = vector.broadcast %c15_i32 : i32 to vector<256x1xi32>
    %19 = arith.cmpi slt, %8, %18 : vector<256x1xi32>
    %c255_i32 = arith.constant 255 : i32
    %20 = tpu.dynamic_rotate %6 by %c255_i32 dim 0 : vector<256x32xf32>, i32 -> vector<256x32xf32>
    %cst_7 = arith.constant 0.000000e+00 : f32
    %21 = vector.shape_cast %19 : vector<256x1xi1> to vector<256x1xi1>
    %22 = vector.broadcast %21 : vector<256x1xi1> to vector<256x32xi1>
    %23 = vector.broadcast %cst_7 : f32 to vector<256x32xf32>
    %24 = arith.select %22, %20, %23 : vector<256x32xi1>, vector<256x32xf32>
    %25 = tpu.concatenate %17, %6, %24 in 1 : vector<256x32xf32>, vector<256x32xf32>, vector<256x32xf32> -> vector<256x96xf32>
    %c0_i32_8 = arith.constant 0 : i32
    %26 = vector.broadcast %c0_i32_8 : i32 to vector<256x1xi32>
    %27 = arith.cmpi sgt, %10, %26 : vector<256x1xi32>
    %c16_i32 = arith.constant 16 : i32
    %28 = tpu.dynamic_rotate %25 by %c16_i32 dim 0 : vector<256x96xf32>, i32 -> vector<256x96xf32>
    %cst_9 = arith.constant 0.000000e+00 : f32
    %29 = vector.shape_cast %27 : vector<256x1xi1> to vector<256x1xi1>
    %30 = vector.broadcast %29 : vector<256x1xi1> to vector<256x96xi1>
    %31 = vector.broadcast %cst_9 : f32 to vector<256x96xf32>
    %32 = arith.select %30, %28, %31 : vector<256x96xi1>, vector<256x96xf32>
    %c15_i32_10 = arith.constant 15 : i32
    %33 = vector.broadcast %c15_i32_10 : i32 to vector<256x1xi32>
    %34 = arith.cmpi slt, %10, %33 : vector<256x1xi32>
    %c240_i32 = arith.constant 240 : i32
    %35 = tpu.dynamic_rotate %25 by %c240_i32 dim 0 : vector<256x96xf32>, i32 -> vector<256x96xf32>
    %cst_11 = arith.constant 0.000000e+00 : f32
    %36 = vector.shape_cast %34 : vector<256x1xi1> to vector<256x1xi1>
    %37 = vector.broadcast %36 : vector<256x1xi1> to vector<256x96xi1>
    %38 = vector.broadcast %cst_11 : f32 to vector<256x96xf32>
    %39 = arith.select %37, %35, %38 : vector<256x96xi1>, vector<256x96xf32>
    %40 = tpu.concatenate %32, %25, %39 in 1 : vector<256x96xf32>, vector<256x96xf32>, vector<256x96xf32> -> vector<256x288xf32>
    %41 = arith.truncf %40 : vector<256x288xf32> to vector<256x288xbf16>
    %c0_12 = arith.constant 0 : index
    %c0_13 = arith.constant 0 : index
    %42 = vector.load %arg3[%c0_12, %c0_13] : memref<288x32xbf16, #tpu.memory_space<vmem>>, vector<288x32xbf16>
    %cst_14 = arith.constant dense<0.000000e+00> : vector<256x32xf32>
    %43 = tpu.matmul %41, %42, %cst_14 {dimension_numbers = #tpu.dot_dimension_numbers<[1], [0], [0], [1], [0, 0, 1, 1], [], []>} : vector<256x288xbf16>, vector<288x32xbf16>, vector<256x32xf32> -> vector<256x32xf32>
    %cst_15 = arith.constant 0.000000e+00 : f32
    %44 = vector.broadcast %cst_15 : f32 to vector<256x32xf32>
    %45 = arith.maximumf %43, %44 : vector<256x32xf32>
    %46 = arith.truncf %45 : vector<256x32xf32> to vector<256x32xbf16>
    %c0_16 = arith.constant 0 : index
    %c0_17 = arith.constant 0 : index
    %47 = vector.load %arg4[%c0_16, %c0_17] : memref<32x128xbf16, #tpu.memory_space<vmem>>, vector<32x128xbf16>
    %cst_18 = arith.constant dense<0.000000e+00> : vector<256x128xf32>
    %48 = tpu.matmul %46, %47, %cst_18 {dimension_numbers = #tpu.dot_dimension_numbers<[1], [0], [0], [1], [0, 0, 1, 1], [], []>} : vector<256x32xbf16>, vector<32x128xbf16>, vector<256x128xf32> -> vector<256x128xf32>
    %c0_19 = arith.constant 0 : index
    %c0_20 = arith.constant 0 : index
    %c0_21 = arith.constant 0 : index
    %c0_22 = arith.constant 0 : index
    %49 = vector.load %arg1[%c0_19, %c0_20, %c0_21, %c0_22] : memref<1x16x16x128xbf16, #tpu.memory_space<vmem>>, vector<1x16x16x128xbf16>
    %50 = vector.shape_cast %49 : vector<1x16x16x128xbf16> to vector<16x16x128xbf16>
    %51 = vector.shape_cast %50 : vector<16x16x128xbf16> to vector<256x128xbf16>
    %52 = arith.extf %51 : vector<256x128xbf16> to vector<256x128xf32>
    %53 = arith.addf %48, %52 : vector<256x128xf32>
    %cst_23 = arith.constant 0.000000e+00 : f32
    %54 = vector.broadcast %cst_23 : f32 to vector<256x128xf32>
    %55 = arith.maximumf %53, %54 : vector<256x128xf32>
    %56 = vector.shape_cast %55 : vector<256x128xf32> to vector<16x16x128xf32>
    %c0_24 = arith.constant 0 : index
    %c0_25 = arith.constant 0 : index
    %c0_26 = arith.constant 0 : index
    %c0_27 = arith.constant 0 : index
    %57 = vector.load %arg5[%c0_24, %c0_25, %c0_26, %c0_27] : memref<1x16x16x128xf32, #tpu.memory_space<vmem>>, vector<1x16x16x128xf32>
    %58 = vector.shape_cast %57 : vector<1x16x16x128xf32> to vector<16x16x128xf32>
    %59 = vector.shape_cast %56 : vector<16x16x128xf32> to vector<1x16x16x128xf32>
    tpu.vector_store %arg5[%c0_24, %c0_25, %c0_26, %c0_27], %59 {strides = array<i32>} : memref<1x16x16x128xf32, #tpu.memory_space<vmem>>, vector<1x16x16x128xf32>,
    return
  }
  func.func @transform_0(%arg0: i32) -> (i32, i32, i32, i32) {
    %c0_i32 = arith.constant 0 : i32
    %c0_i32_0 = arith.constant 0 : i32
    %c0_i32_1 = arith.constant 0 : i32
    %c0_i32_2 = arith.constant 0 : i32
    return %arg0, %c0_i32, %c0_i32_0, %c0_i32_1 : i32, i32, i32, i32
  }
  func.func @transform_1(%arg0: i32) -> (i32, i32) {
    %c0_i32 = arith.constant 0 : i32
    %c0_i32_0 = arith.constant 0 : i32
    %c0_i32_1 = arith.constant 0 : i32
    return %c0_i32, %c0_i32_0 : i32, i32
  }
  func.func @transform_2(%arg0: i32) -> (i32, i32) {
    %c0_i32 = arith.constant 0 : i32
    %c0_i32_0 = arith.constant 0 : i32
    %c0_i32_1 = arith.constant 0 : i32
    return %c0_i32, %c0_i32_0 : i32, i32
  }
  func.func @transform_3(%arg0: i32) -> (i32, i32) {
    %c0_i32 = arith.constant 0 : i32
    %c0_i32_0 = arith.constant 0 : i32
    %c0_i32_1 = arith.constant 0 : i32
    return %c0_i32, %c0_i32_0 : i32, i32
  }
  func.func @transform_4(%arg0: i32) -> (i32, i32, i32, i32) {
    %c0_i32 = arith.constant 0 : i32
    %c0_i32_0 = arith.constant 0 : i32
    %c0_i32_1 = arith.constant 0 : i32
    %c0_i32_2 = arith.constant 0 : i32
    return %arg0, %c0_i32, %c0_i32_0, %c0_i32_1 : i32, i32, i32, i32
  }
}

</mosaic_0001>

<bundles_post_ra>
// kernel: tpu_custom_call.1
= control target key start
LH: loop header
LB: loop body
LE: loop exit
PB: predicated region body
PF: predicated region fallthrough
CT: control target
= control target key end

     0   :  { %9 = vsyncpa [#allocation3], 0  ;;  %s4296_s0 = inlined_call_operand.hbm [shape: bf16[2,16,16,128], index: 0, kind: input, shape index: {}]   ;;  %s4297_s1 = inlined_call_operand.vmem [shape: bf16[128,32], index: 1, kind: input, shape index: {}]   ;;  %s4298_s2 = inlined_call_operand.vmem [shape: bf16[288,32], index: 2, kind: input, shape index: {}]   ;;  %s4299_s3 = inlined_call_operand.vmem [shape: bf16[32,128], index: 3, kind: input, shape index: {}]   ;;  %s4300_s4 = inlined_call_operand.hbm [shape: f32[2,16,16,128], index: 4, kind: output, shape index: {}]  }
   0x1   :  { %11 = vsyncpa [#allocation3 + $0x1], 0 }
   0x2   :  { %12 = vsyncpa [#allocation4], 0 }
   0x3   :  { %14 = vsyncpa [#allocation4 + $0x1], 0  ;;  %s3034_s15 = smov 0   ;;  %s3036_s16 = smov 0  }
   0x4   :  { %s3038_s17 = smov 0   ;;  %s3040_s18 = smov 0  }
   0x5 LB: > { %s3055_s19 = sadd.s32 4294967295, %s2999_s18   ;;  %s2243_s20 = sadd.s32 4294967294, %s2999_s18   ;;  %s2999_s18 = sphi %s3040_s18, %s4312_s18   ;;  %s2995_s17 = sphi %s3038_s17, %s4311_s17   ;;  %s2991_s16 = sphi %s3036_s16, %s4310_s16   ;;  %s2987_s15 = sphi %s3034_s15, %s4309_s15  }
   0x6   : > { %s3059_s21 = sadd.s32 1, %s2999_s18   ;;  %s27_s22 = sadd.s32 1, %s2995_s17 }
   0x7   : > { %s24_s23 = ssub.s32 %s2999_s18, %s3059_s21  ;;  %p34_p0 = scmp.ne.s32.totalorder %s2995_s17, %s2991_s16 }
   0x8   : > { %p25_p1 = scmp.eq.s32.totalorder %s24_s23, 0  ;;  %p35_p2 = scmp.eq.s32.totalorder %s2999_s18, 0 }
   0x9   : > { %p40_p3 = scmp.ne.s32.totalorder %s2991_s16, %s2987_s15  ;;  %p41_p4 = scmp.eq.s32.totalorder %s3055_s19, 0 }
   0xa   : > { %s3071_s24 = scalar_select %p25_p1, %s2995_s17, %s27_s22  }
   0xb   : > { %p3073_p5 = por %p35_p2, %p34_p0  ;;  %p3077_p6 = por %p41_p4, %p40_p3 }
   0xc   : > { %p127_p7 = scmp.eq.s32.totalorder %s3055_s19, 1  ;;  %p133_p8 = scmp.eq.s32.totalorder %s2243_s20, 1 }
   0xd   : > { %p2546_p10 = scmp.lt.s32.totalorder %s2999_s18, 2  ;;  %s162_s29 = sand.u32 1, %s2995_s17  }
   0xe   : > { %p3084_p11 = por %p127_p7, %p34_p0  ;;  %p3088_p12 = por %p133_p8, %p40_p3 }
   0xf   : > { %s2470_s30 = sshll.u32 %s2999_s18, 7  ;;  %s2246_s5 = sshll.u32 %s162_s29, 7 }
  0x10   : > { %s171_s8 = scalar_lea.hbm %s4296_s0, %s2470_s30  ;;  %s166_s10 = scalar_lea.vmem [#allocation2], %s2246_s5 }
  0x11   : > { %s172_s9 = sshll.u32 %s171_s8, 4  ;;  %s174_s11 = sshll.u32 %s166_s10, 4  ;;  %s173_s9 = int_to_ptr.hbm [resolvable:$true] %s172_s9  ;;  %s175_s11 = int_to_ptr.vmem [resolvable:$true] %s174_s11 }
  0x12   : > { %p3099_p13 = pnand %p2546_p10, %p3073_p5  ;;  %p2249_p0 = scmp.ge.s32.totalorder %s2999_s18, 1 }
  0x13   : > { %p182_p1 = scmp.lt.s32.totalorder %s2999_s18, 3  ;;  %s163_s13 = scalar_lea.sflag [#allocation3], %s162_s29 }
  0x14   : > { %s2903_s14 = sshra.s32 %s173_s9, 4  ;;  %p2907_p3 = pneg %p3099_p13  ;;  %s2904_s14 = int_to_ptr.hbm [resolvable:$true] %s2903_s14 }
  0x15   : > { %s2905_s20 = scalar_lea.hbm %s2904_s14, 128  ;;  %s2910_s25 = scalar_lea.hbm %s4296_s0, 256 }
  0x16   : > { %p2906_p2 = scmp.ne.s32.totalorder %s2904_s14, %s2905_s20  ;;  %p2911_p5 = scmp.lt.s32.totalorder %s2904_s14, %s4296_s0 }
  0x17   : > { %p2912_p8 = scmp.lt.s32.totalorder %s2910_s25, %s2905_s20 }
  0x18   : > { %p2908_p4 = pnand %p2907_p3, %p2906_p2 }
  0x19   : > { %p2913_p10 = por %p2912_p8, %p2911_p5 }
  0x1a   : > { %p2909_p7 = pneg %p2908_p4 }
  0x1c   : > { %p2914_p9 = pnand %p2913_p10, %p2909_p7 }
  0x1e   : > { %2917 = shalt.err (!%p2914_p9)
}
  0x1f   : > { %s3001_s29 = smov 64   ;;  %s3002_s6 = smov 4  }
  0x20   : > { %2541 = dma.hbm_to_vmem [thread:$0]  (!%p3099_p13), %s173_s9, 2048, %s175_s11, %s163_s13, %s3001_s29, %s3001_s29, %s3002_s6  }
  0x21   : > { %p183_p2 = pnand %p2249_p0, %p182_p1 }
  0x22   : > { %s3120_s7 = sand.u32 (!%p183_p2), 1, %s2991_s16  }
  0x23   : > { %186 = sbr.rel (%p183_p2) target bundleno = 1178 (0x49a), region = 36  ;;  %s2250_s8 = sshll.u32 (!%p183_p2), %s3120_s7, 7 }
  0x24   : > { %s189_s10 = scalar_lea.sflag (!%p183_p2), [#allocation3], %s3120_s7  ;;  %s3124_s14 = scalar_lea.vmem (!%p183_p2), [#allocation2], %s2250_s8 }
  0x28   : > { %2978 = dma.done.wait (%p3077_p6), %s189_s10, 2048  }
  0x29   : > { %2980 = vsyncadd (%p3077_p6), %s189_s10, 4294965248  ;;  %v2494_v0 = vld [vmem:[%s4297_s1 + $0x38] sm:$0xff]  ;;  %v2493_v1 = vld [vmem:[%s4297_s1 + $0x30] sm:$0xff]  ;;  %v532_v24 = vlaneseq  ;;  %s3003_s11 = smov 32   ;;  %s3004_s12 = smov 64   ;;  %vm997_vm3 = vcmask 261120  }
  0x2a   : > { %411 = vmatpush.bf16.msra.mxu0 %v2494_v0  ;;  %2517 = vmatpush.bf16.msra.mxu2 %v2494_v0  ;;  %v2492_v2 = vld [vmem:[%s4297_s1 + $0x28] sm:$0xff]  ;;  %v2491_v3 = vld [vmem:[%s4297_s1 + $0x20] sm:$0xff]  ;;  %v2490_v4 = vld [vmem:[%s4297_s1 + $0x18] sm:$0xff]  ;;  %vm1030_vm5 = vcmask 523264   ;;  %s3005_s13 = smov 96   ;;  %vm1285_vm6 = vcmask 785408  }
  0x2b   : > { %2516 = vmatpush.bf16.msra.mxu1 %v2494_v0  ;;  %v2489_v5 = vld [vmem:[%s4297_s1 + $0x10] sm:$0xff]  ;;  %v2488_v6 = vld [vmem:[%s4297_s1 + $0x8] sm:$0xff]  ;;  %v2487_v7 = vld [vmem:[%s4297_s1] sm:$0xff]  ;;  %v3169_v25 = vshrl.u32 %v532_v24, 7  ;;  %s2515_s23 = sshll.u32 %s3055_s19, 8 }
  0x2c   : > { %v2471_v8 = vld [vmem:[%s3124_s14] sm:$0xff]  ;;  %v2472_v10 = vld [vmem:[%s3124_s14 + $0x8] sm:$0xff]  ;;  %v2481_v12 = vld [vmem:[%s3124_s14 + $0x50] sm:$0xff]  ;;  %s2166_s5 = scalar_lea.hbm %s4300_s4, %s2515_s23 }
  0x2d   : > { %v2483_v9 = vld [vmem:[%s3124_s14 + $0x60] sm:$0xff]  ;;  %v2484_v11 = vld [vmem:[%s3124_s14 + $0x68] sm:$0xff]  ;;  %v2473_v13 = vld [vmem:[%s3124_s14 + $0x10] sm:$0xff]  ;;  %vm569_vm0 = vcmp.lt.s32.totalorder %v3169_v25, 1  ;;  %v3185_v34 = vadd.s32 8, %v3169_v25  ;;  %vm672_vm2 = vcmp.lt.s32.totalorder %v3169_v25, 7 }
  0x2e   : > { %412 = vmatpush.bf16.msra.mxu0 %v2493_v1  ;;  %2519 = vmatpush.bf16.msra.mxu2 %v2493_v1  ;;  %v2485_v14 = vld [vmem:[%s3124_s14 + $0x70] sm:$0xff]  ;;  %v2482_v15 = vld [vmem:[%s3124_s14 + $0x58] sm:$0xff]  ;;  %v2475_v18 = vld [vmem:[%s3124_s14 + $0x20] sm:$0xff]  ;;  %vm535_vm4 = vcmp.gt.s32.totalorder %v3169_v25, 0  ;;  %s2169_s6 = sshll.u32 %s2166_s5, 4  ;;  %s2170_s6 = int_to_ptr.hbm [resolvable:$true] %s2169_s6 }
  0x2f   : > { %2518 = vmatpush.bf16.msra.mxu1 %v2493_v1  ;;  %v2474_v16 = vld [vmem:[%s3124_s14 + $0x18] sm:$0xff]  ;;  %v2476_v19 = vld [vmem:[%s3124_s14 + $0x28] sm:$0xff]  ;;  %v2477_v20 = vld [vmem:[%s3124_s14 + $0x30] sm:$0xff]  ;;  %vm639_vm1 = vcmp.lt.s32.totalorder %v3185_v34, 15  ;;  %s2947_s8 = sshra.s32 %s2170_s6, 4  ;;  %s2948_s8 = int_to_ptr.hbm [resolvable:$true] %s2947_s8 }
  0x30   : > { %v2486_v17 = vld [vmem:[%s3124_s14 + $0x78] sm:$0xff]  ;;  %v2479_v22 = vld [vmem:[%s3124_s14 + $0x40] sm:$0xff]  ;;  %v2480_v33 = vld [vmem:[%s3124_s14 + $0x48] sm:$0xff]  ;;  %s2949_s19 = scalar_lea.hbm %s2948_s8, 256  ;;  %p2954_p0 = scmp.lt.s32.totalorder %s2948_s8, %s4300_s4 }
  0x31   : > { %v2478_v21 = vld [vmem:[%s3124_s14 + $0x38] sm:$0xff]  ;;  %vm3600_vm7 = vmneg %vm1285_vm6  ;;  %p2950_p6 = scmp.ne.s32.totalorder %s2948_s8, %s2949_s19 }
  0x32   : > { %413 = vmatpush.bf16.msra.mxu0 %v2492_v2  ;;  %2521 = vmatpush.bf16.msra.mxu2 %v2492_v2  ;;  %vm2422_vm8 = vmpackc.low %vm3600_vm7, %vm3600_vm7 }
  0x33   : > { %2520 = vmatpush.bf16.msra.mxu1 %v2492_v2  ;;  %p2951_p9 = pnand %p2950_p6, %p3084_p11 }
  0x35   : > { %p2952_p13 = pneg %p2951_p9 }
  0x36   : > { %414 = vmatpush.bf16.msra.mxu0 %v2491_v3  ;;  %2523 = vmatpush.bf16.msra.mxu2 %v2491_v3 }
  0x37   : > { %2522 = vmatpush.bf16.msra.mxu1 %v2491_v3 }
  0x3a   : > { %415 = vmatpush.bf16.msra.mxu0 %v2490_v4  ;;  %2525 = vmatpush.bf16.msra.mxu2 %v2490_v4 }
  0x3b   : > { %2524 = vmatpush.bf16.msra.mxu1 %v2490_v4 }
  0x3e   : > { %416 = vmatpush.bf16.msra.mxu0 %v2489_v5  ;;  %2527 = vmatpush.bf16.msra.mxu2 %v2489_v5 }
  0x3f   : > { %2526 = vmatpush.bf16.msra.mxu1 %v2489_v5 }
  0x42   : > { %417 = vmatpush.bf16.msra.mxu0 %v2488_v6  ;;  %2529 = vmatpush.bf16.msra.mxu2 %v2488_v6 }
  0x43   : > { %2528 = vmatpush.bf16.msra.mxu1 %v2488_v6 }
  0x46   : > { %418 = vmatpush.bf16.msra.mxu0 %v2487_v7  ;;  %2531 = vmatpush.bf16.msra.mxu2 %v2487_v7 }
  0x47   : > { %2530 = vmatpush.bf16.msra.mxu1 %v2487_v7 }
  0x49   : > { %419 = vmatmul.bf16.vlgmr.msra.gmra.mxu0 %v2471_v8  ;;  %479 = vmatmul.bf16.vlgmr.msra.gmra.mxu2 %v2483_v9 }
  0x4a   : > { %469 = vmatmul.bf16.vlgmr.msra.gmra.mxu1 %v2481_v12 }
  0x59   : > { %424 = vmatmul.bf16.gmra.mxu0 %v2472_v10  ;;  %484 = vmatmul.bf16.gmra.mxu2 %v2484_v11 }
  0x5a   : > { %474 = vmatmul.bf16.gmra.mxu1 %v2482_v15 }
  0x69   : > { %429 = vmatmul.bf16.gmra.mxu0 %v2473_v13  ;;  %489 = vmatmul.bf16.gmra.mxu2 %v2485_v14 }
  0x79   : > { %434 = vmatmul.bf16.gmra.mxu0 %v2474_v16  ;;  %494 = vmatmul.bf16.gmra.mxu2 %v2486_v17 }
  0x89   : > { %439 = vmatmul.bf16.gmra.mxu0 %v2475_v18 }
  0x99   : > { %444 = vmatmul.bf16.gmra.mxu0 %v2476_v19 }
  0xa9   : > { %449 = vmatmul.bf16.gmra.mxu0 %v2477_v20 }
  0xb9   : > { %454 = vmatmul.bf16.gmra.mxu0 %v2478_v21 }
  0xc6   : > { %v420_v23 = vpop.f32.mrf.mxu0 }
  0xc7   : > { %v3171_v26 = vmax.f32 %v420_v23, 0.0  ;;  %v3218_v60 = vpop.f32.mrf.mxu1 }
  0xc9   : > { %459 = vmatmul.bf16.gmra.mxu0 %v2479_v22  ;;  %v537_v29 = vrot.slane %v3171_v26, 7  ;;  %v640_v40 = vrot.slane %v3171_v26, 1 }
  0xcc   : > { %v480_v14 = vpop.f32.mrf.mxu2 }
  0xce   : > { %v422_v27 = vpop.f32.mrf.mxu0 }
  0xcf   : > { %v501_v28 = vmax.f32 %v422_v27, 0.0  ;;  %v3226_v4 = vpop.f32.mrf.mxu1 }
  0xd1   : > { %v538_v30 = vrot.slane %v501_v28, 7  ;;  %v2588_v31 = vpack.i.bf16 %v501_v28, %v3171_v26  ;;  %v641_v37 = vrot.slane %v501_v28, 1  ;;  %v2505_v26 = vld [vmem:[%s4298_s2 + $0x50] sm:$0xff] }
  0xd3   : > { %2589 = vrot.lane.b32.xlu0 %v2588_v31, %s3003_s11  ;;  %v3181_v32 = vsel %vm569_vm0, %v537_v29, %v538_v30  ;;  %v703_v43 = vsel %vm672_vm2, %v640_v40, %v641_v37 }
  0xd4   : > { %v482_v23 = vpop.f32.mrf.mxu2 }
  0xd6   : > { %v425_v35 = vpop.f32.mrf.mxu0 }
  0xd7   : > { %v502_v36 = vmax.f32 %v425_v35, 0.0  ;;  %v475_v17 = vpop.f32.mrf.mxu1 }
  0xd9   : > { %v539_v38 = vrot.slane %v502_v36, 7  ;;  %v642_v39 = vrot.slane %v502_v36, 1  ;;  %464 = vmatmul.bf16.gmra.mxu0 %v2480_v33 }
  0xdb   : > { %v702_v41 = vsel %vm672_vm2, %v641_v37, %v642_v39  ;;  %v3194_v42 = vsel %vm569_vm0, %v538_v30, %v539_v38  ;;  %v3254_v37 = vmax.f32 %v480_v14, 0.0 }
  0xdc   : > { %v710_v44 = vsel %vm639_vm1, %v702_v41, 0.0 }
  0xdd   : > { %v2598_v45 = vpack.i.bf16 %v710_v44, %v703_v43  ;;  %v3259_v44 = vmax.f32 %v475_v17, 0.0 }
  0xde   : > { %v427_v46 = vpop.f32.mrf.mxu0 }
  0xdf   : > { %v503_v47 = vmax.f32 %v427_v46, 0.0  ;;  %2599 = vrot.lane.b32.xlu1 %v2598_v45, %s3004_s12  ;;  %v477_v30 = vpop.f32.mrf.mxu1  ;;  %v664_v45 = vrot.slane %v3254_v37, 1 }
  0xe1   : > { %v540_v48 = vrot.slane %v503_v47, 7  ;;  %v2593_v49 = vpack.i.bf16 %v503_v47, %v502_v36  ;;  %v643_v53 = vrot.slane %v503_v47, 1 }
  0xe3   : > { %2594 = vrot.lane.b32.xlu0 %v2593_v49, %s3003_s11  ;;  %v3206_v50 = vsel %vm569_vm0, %v539_v38, %v540_v48  ;;  %v701_v58 = vsel %vm672_vm2, %v642_v39, %v643_v53  ;;  %v3256_v39 = vmax.f32 %v477_v30, 0.0 }
  0xe5   : > { %v663_v47 = vrot.slane %v3256_v39, 1 }
  0xe6   : > { %v430_v51 = vpop.f32.mrf.mxu0 }
  0xe7   : > { %v504_v52 = vmax.f32 %v430_v51, 0.0  ;;  %v662_v51 = vrot.slane %v3259_v44, 1 }
  0xe9   : > { %v541_v54 = vrot.slane %v504_v52, 7  ;;  %v644_v55 = vrot.slane %v504_v52, 1 }
  0xeb   : > { %v700_v56 = vsel %vm672_vm2, %v643_v53, %v644_v55  ;;  %v3212_v57 = vsel %vm569_vm0, %v540_v48, %v541_v54  ;;  %v485_v48 = vpop.f32.mrf.mxu2  ;;  %v680_v53 = vsel %vm672_vm2, %v663_v47, %v664_v45 }
  0xec   : > { %v712_v59 = vsel %vm639_vm1, %v700_v56, 0.0 }
  0xed   : > { %v2603_v61 = vpack.i.bf16 %v712_v59, %v701_v58  ;;  %v681_v58 = vsel %vm672_vm2, %v662_v51, %v663_v47  ;;  %v732_v59 = vsel %vm639_vm1, %v680_v53, 0.0 }
  0xee   : > { %v432_v62 = vpop.f32.mrf.mxu0 }
  0xef   : > { %v505_v63 = vmax.f32 %v432_v62, 0.0  ;;  %2604 = vrot.lane.b32.xlu1 %v2603_v61, %s3004_s12 }
  0xf1   : > { %v542_v0 = vrot.slane %v505_v63, 7  ;;  %v2608_v1 = vpack.i.bf16 %v505_v63, %v504_v52  ;;  %v645_v6 = vrot.slane %v505_v63, 1  ;;  %v2653_v63 = vpack.i.bf16 %v732_v59, %v681_v58 }
  0xf3   : > { %2609 = vrot.lane.b32.xlu2 %v2608_v1, %s3003_s11  ;;  %v3224_v2 = vsel %vm569_vm0, %v541_v54, %v542_v0  ;;  %v699_v11 = vsel %vm672_vm2, %v644_v55, %v645_v6 }
  0xf6   : > { %v435_v3 = vpop.f32.mrf.mxu0 }
  0xf7   : > { %v506_v5 = vmax.f32 %v435_v3, 0.0  ;;  %v487_v3 = vpop.f32.mrf.mxu2 }
  0xf9   : > { %v543_v7 = vrot.slane %v506_v5, 7  ;;  %v646_v8 = vrot.slane %v506_v5, 1 }
  0xfb   : > { %v698_v9 = vsel %vm672_vm2, %v645_v6, %v646_v8  ;;  %v3232_v10 = vsel %vm569_vm0, %v542_v0, %v543_v7 }
  0xfc   : > { %v714_v12 = vsel %vm639_vm1, %v698_v9, 0.0 }
  0xfd   : > { %v2613_v13 = vpack.i.bf16 %v714_v12, %v699_v11 }
  0xfe   : > { %v437_v15 = vpop.f32.mrf.mxu0 }
  0xff   : > { %v507_v16 = vmax.f32 %v437_v15, 0.0  ;;  %2614 = vrot.lane.b32.xlu2 %v2613_v13, %s3004_s12 }
 0x101   : > { %v544_v18 = vrot.slane %v507_v16, 7  ;;  %v2618_v19 = vpack.i.bf16 %v507_v16, %v506_v5  ;;  %v647_v24 = vrot.slane %v507_v16, 1 }
 0x103   : > { %2619 = vrot.lane.b32.xlu0 %v2618_v19, %s3003_s11  ;;  %v3242_v20 = vsel %vm569_vm0, %v543_v7, %v544_v18  ;;  %v697_v35 = vsel %vm672_vm2, %v646_v8, %v647_v24  ;;  %v3293_v7 = vmax.f32 %v482_v23, 0.0  ;;  %v3295_v8 = vmax.f32 %v485_v48, 0.0  ;;  %v490_v19 = vpop.f32.mrf.mxu2 }
 0x105   : > { %v665_v13 = vrot.slane %v3293_v7, 1  ;;  %v666_v14 = vrot.slane %v3295_v8, 1 }
 0x106   : > { %v440_v21 = vpop.f32.mrf.mxu0 }
 0x107   : > { %v508_v22 = vmax.f32 %v440_v21, 0.0  ;;  %v679_v23 = vsel %vm672_vm2, %v664_v45, %v665_v13 }
 0x109   : > { %v545_v27 = vrot.slane %v508_v22, 7  ;;  %v648_v28 = vrot.slane %v508_v22, 1 }
 0x10b   : > { %v696_v31 = vsel %vm672_vm2, %v647_v24, %v648_v28  ;;  %v3248_v33 = vsel %vm569_vm0, %v544_v18, %v545_v27  ;;  %v678_v18 = vsel %vm672_vm2, %v665_v13, %v666_v14 }
 0x10c   : > { %v716_v36 = vsel %vm639_vm1, %v696_v31, 0.0  ;;  %v734_v24 = vsel %vm639_vm1, %v678_v18, 0.0 }
 0x10d   : > { %v2623_v38 = vpack.i.bf16 %v716_v36, %v697_v35  ;;  %v3327_v36 = vpop.f32.mrf.mxu2 }
 0x10e   : > { %v442_v41 = vpop.f32.mrf.mxu0 }
 0x10f   : > { %v509_v43 = vmax.f32 %v442_v41, 0.0  ;;  %2624 = vrot.lane.b32.xlu1 %v2623_v38, %s3004_s12  ;;  %v3332_v41 = vmax.f32 %v487_v3, 0.0 }
 0x111   : > { %v546_v46 = vrot.slane %v509_v43, 7  ;;  %v2628_v52 = vpack.i.bf16 %v509_v43, %v508_v22  ;;  %v649_v56 = vrot.slane %v509_v43, 1  ;;  %v3334_v43 = vmax.f32 %v490_v19, 0.0 }
 0x113   : > { %v3265_v49 = vsel %vm569_vm0, %v545_v27, %v546_v46  ;;  %v695_v5 = vsel %vm672_vm2, %v648_v28, %v649_v56  ;;  %v2683_v28 = vpack.i.bf16 %v734_v24, %v679_v23  ;;  %v668_v47 = vrot.slane %v3334_v43, 1 }
 0x115   : > { %v3336_v45 = vpop.f32.mrf.mxu2 }
 0x116   : > { %v445_v54 = vpop.f32.mrf.mxu0 }
 0x117   : > { %v3270_v55 = vmax.f32 %v445_v54, 0.0  ;;  %2629 = vrot.lane.b32.xlu1 %v2628_v52, %s3003_s11 }
 0x119   : > { %v547_v61 = vrot.slane %v3270_v55, 7  ;;  %v650_v62 = vrot.slane %v3270_v55, 1 }
 0x11b   : > { %v694_v0 = vsel %vm672_vm2, %v649_v56, %v650_v62  ;;  %v3287_v1 = vsel %vm569_vm0, %v546_v46, %v547_v61  ;;  %v667_v46 = vrot.slane %v3332_v41, 1 }
 0x11c   : > { %v718_v6 = vsel %vm639_vm1, %v694_v0, 0.0 }
 0x11d   : > { %v2633_v9 = vpack.i.bf16 %v718_v6, %v695_v5  ;;  %v676_v48 = vsel %vm672_vm2, %v667_v46, %v668_v47  ;;  %v677_v52 = vsel %vm672_vm2, %v666_v14, %v667_v46  ;;  %v497_v56 = vpop.f32.mrf.mxu2 }
 0x11e   : > { %v447_v11 = vpop.f32.mrf.mxu0  ;;  %v736_v53 = vsel %vm639_vm1, %v676_v48, 0.0  ;;  %v3349_v58 = vmax.f32 %v497_v56, 0.0 }
 0x11f   : > { %v3297_v12 = vmax.f32 %v447_v11, 0.0  ;;  %2654 = vrot.lane.b32.xlu1 %v2653_v63, %s3004_s12  ;;  %2634 = vrot.lane.b32.xlu2 %v2633_v9, %s3004_s12  ;;  %v2713_v54 = vpack.i.bf16 %v736_v53, %v677_v52 }
 0x120   : > { %v568_v59 = vrot.slane %v3349_v58, 7 }
 0x121   : > { %v548_v15 = vrot.slane %v3297_v12, 7  ;;  %v2658_v16 = vpack.i.bf16 %v3297_v12, %v3270_v55  ;;  %v651_v14 = vrot.slane %v3297_v12, 1 }
 0x122   : > { %v601_v0 = vsel %vm569_vm0, %v568_v59, %v537_v29 }
 0x123   : > { %v3308_v17 = vsel %vm569_vm0, %v547_v61, %v548_v15  ;;  %v606_v9 = vsel %vm535_vm4, %v601_v0, 0.0  ;;  %v693_v24 = vsel %vm672_vm2, %v650_v62, %v651_v14 }
 0x126   : > { %v450_v21 = vpop.f32.mrf.mxu0 }
 0x127   : > { %v3312_v22 = vmax.f32 %v450_v21, 0.0  ;;  %2659 = vrot.lane.b32.xlu1 %v2658_v16, %s3003_s11 }
 0x129   : > { %v549_v27 = vrot.slane %v3312_v22, 7 }
 0x12b   : > { %v3322_v30 = vsel %vm569_vm0, %v548_v15, %v549_v27  ;;  %v652_v15 = vrot.slane %v3312_v22, 1 }
 0x12d   : > { %v692_v12 = vsel %vm672_vm2, %v651_v14, %v652_v15 }
 0x12e   : > { %v452_v31 = vpop.f32.mrf.mxu0 }
 0x12f   : > { %v3324_v35 = vmax.f32 %v452_v31, 0.0  ;;  %2684 = vrot.lane.b32.xlu1 %v2683_v28, %s3004_s12  ;;  %v720_v28 = vsel %vm639_vm1, %v692_v12, 0.0 }
 0x130   : > { %v2663_v46 = vpack.i.bf16 %v720_v28, %v693_v24 }
 0x131   : > { %v2688_v38 = vpack.i.bf16 %v3324_v35, %v3312_v22  ;;  %v550_v22 = vrot.slane %v3324_v35, 7  ;;  %v653_v62 = vrot.slane %v3324_v35, 1 }
 0x133   : > { %v3389_v48 = vsel %vm569_vm0, %v549_v27, %v550_v22 }
 0x136   : > { %v455_v63 = vpop.f32.mrf.mxu0 }
 0x137   : > { %2689 = vrot.lane.b32.xlu1 %v2688_v38, %s3003_s11  ;;  %v3378_v23 = vmax.f32 %v455_v63, 0.0 }
 0x139   : > { %v551_v31 = vrot.slane %v3378_v23, 7 }
 0x13b   : > { %v3394_v55 = vsel %vm569_vm0, %v550_v22, %v551_v31 }
 0x13f   : > { %2714 = vrot.lane.b32.xlu1 %v2713_v54, %s3004_s12  ;;  %v654_v54 = vrot.slane %v3378_v23, 1 }
 0x145   : > { %v2590_v61 = vpop.permute.xlu0 %2589 }
 0x146   : > { %v2592_v3 = vunpack.i.h.bf16 %v2590_v61  ;;  %v2591_v5 = vunpack.i.l.bf16 %v2590_v61  ;;  %v608_v61 = vsel %vm535_vm4, %v3194_v42, 0.0  ;;  %v690_v42 = vsel %vm672_vm2, %v653_v62, %v654_v54 }
 0x147   : > { %v722_v14 = vsel %vm639_vm1, %v690_v42, 0.0 }
 0x148   : > { %v998_v16 = vsel %vm997_vm3, %v606_v9, %v2591_v5  ;;  %v999_v29 = vsel %vm997_vm3, %v3181_v32, %v2592_v3  ;;  %v457_v32 = vpop.f32.mrf.mxu0 }
 0x14d   : > { %v2610_v3 = vpop.permute.xlu2 %2609 }
 0x14e   : > { %v2612_v24 = vunpack.i.h.bf16 %v2610_v3  ;;  %v2611_v28 = vunpack.i.l.bf16 %v2610_v3 }
 0x150   : > { %v460_v0 = vpop.f32.mrf.mxu0 }
 0x151   : > { %v2600_v6 = vpop.permute.xlu1 %2599 }
 0x152   : > { %v2602_v11 = vunpack.i.h.bf16 %v2600_v6  ;;  %v2601_v13 = vunpack.i.l.bf16 %v2600_v6 }
 0x154   : > { %v3367_v18 = vsel %vm1030_vm5, %v998_v16, %v2601_v13  ;;  %v3370_v19 = vsel %vm1030_vm5, %v999_v29, %v2602_v11  ;;  %v3416_v13 = vmax.f32 %v460_v0, 0.0  ;;  %v3424_v16 = vmax.f32 %v457_v32, 0.0 }
 0x155   : > { %v2638_v21 = vpack.i.bf16 %v3370_v19, %v3367_v18  ;;  %v2595_v38 = vpop.permute.xlu0 %2594 }
 0x156   : > { %v2597_v52 = vunpack.i.h.bf16 %v2595_v38  ;;  %v2596_v53 = vunpack.i.l.bf16 %v2595_v38  ;;  %v552_v29 = vrot.slane %v3424_v16, 7 }
 0x157   : > { %2639 = vrot.lane.b32.xlu2 %v2638_v21, %s3005_s13  ;;  %v553_v21 = vrot.slane %v3416_v13, 7 }
 0x158   : > { %v1000_v5 = vsel %vm997_vm3, %v608_v61, %v2596_v53  ;;  %v1001_v6 = vsel %vm997_vm3, %v3206_v50, %v2597_v52  ;;  %v691_v50 = vsel %vm672_vm2, %v652_v15, %v653_v62  ;;  %v462_v38 = vpop.f32.mrf.mxu0  ;;  %v3434_v15 = vsel %vm569_vm0, %v551_v31, %v552_v29  ;;  %v2502_v31 = vld [vmem:[%s4298_s2 + $0x38] sm:$0xff] }
 0x159   : > { %v2615_v12 = vpop.permute.xlu2 %2614  ;;  %v2693_v22 = vpack.i.bf16 %v722_v14, %v691_v50  ;;  %v3438_v32 = vsel %vm569_vm0, %v552_v29, %v553_v21  ;;  %v610_v62 = vsel %vm535_vm4, %v3212_v57, 0.0  ;;  %v1003_v61 = vsel %vm997_vm3, %v3224_v2, %v2612_v24  ;;  %1590 = vmatpush.bf16.msrb.mxu1 %v2502_v31  ;;  %v2500_v29 = vld [vmem:[%s4298_s2 + $0x28] sm:$0xff]  ;;  %v2499_v31 = vld [vmem:[%s4298_s2 + $0x20] sm:$0xff] }
 0x15a   : > { %v2617_v52 = vunpack.i.h.bf16 %v2615_v12  ;;  %v2616_v53 = vunpack.i.l.bf16 %v2615_v12  ;;  %v3457_v57 = vmax.f32 %v462_v38, 0.0  ;;  %v2723_v50 = vpack.i.bf16 %v3424_v16, %v3378_v23  ;;  %v2508_v23 = vld [vmem:[%s4298_s2 + $0x68] sm:$0xff] }
 0x15b   : > { %v656_v12 = vrot.slane %v3416_v13, 1  ;;  %v3478_v24 = vmax.f32 %v3327_v36, 0.0 }
 0x15f   : > { %2664 = vrot.lane.b32.xlu2 %v2663_v46, %s3004_s12  ;;  %v2648_v46 = vpack.i.bf16 %v3256_v39, %v3259_v44 }
 0x160   : > { %v465_v3 = vpop.f32.mrf.mxu0 }
 0x161   : > { %v2605_v56 = vpop.permute.xlu1 %2604  ;;  %v3461_v2 = vmax.f32 %v465_v3, 0.0 }
 0x162   : > { %v2607_v63 = vunpack.i.h.bf16 %v2605_v56  ;;  %v2606_v27 = vunpack.i.l.bf16 %v2605_v56  ;;  %v1002_v56 = vsel %vm997_vm3, %v610_v62, %v2611_v28 }
 0x163   : > { %v658_v14 = vrot.slane %v3461_v2, 1 }
 0x164   : > { %v3405_v9 = vsel %vm1030_vm5, %v1000_v5, %v2606_v27  ;;  %v3408_v35 = vsel %vm1030_vm5, %v1001_v6, %v2607_v63  ;;  %v3447_v63 = vsel %vm1030_vm5, %v1002_v56, %v2616_v53  ;;  %v3450_v27 = vsel %vm1030_vm5, %v1003_v61, %v2617_v52  ;;  %v2501_v5 = vld [vmem:[%s4298_s2 + $0x30] sm:$0xff] }
 0x165   : > { %v2643_v11 = vpack.i.bf16 %v3408_v35, %v3405_v9  ;;  %v2673_v0 = vpack.i.bf16 %v3450_v27, %v3447_v63  ;;  %v657_v6 = vrot.slane %v3457_v57, 1  ;;  %1591 = vmatpush.bf16.msrb.mxu1 %v2501_v5  ;;  %v3503_v56 = vmax.f32 %v3336_v45, 0.0 }
 0x167   : > { %2644 = vrot.lane.b32.xlu0 %v2643_v11, %s3004_s12  ;;  %2669 = vrot.lane.b32.xlu2 %v2643_v11, %s3005_s13  ;;  %v554_v11 = vrot.slane %v3457_v57, 7  ;;  %v686_v38 = vsel %vm672_vm2, %v657_v6, %v658_v14  ;;  %v3488_v52 = vsel %vm672_vm2, %v656_v12, %v657_v6 }
 0x168   : > { %v3492_v53 = vsel %vm639_vm1, %v686_v38, 0.0  ;;  %v2497_v38 = vld [vmem:[%s4298_s2 + $0x10] sm:$0xff] }
 0x169   : > { %v3498_v36 = vsel %vm569_vm0, %v553_v21, %v554_v11  ;;  %1592 = vmatpush.bf16.msrb.mxu1 %v2500_v29  ;;  %v2773_v62 = vpack.i.bf16 %v3492_v53, %v3488_v52  ;;  %v669_v21 = vrot.slane %v3478_v24, 1  ;;  %v670_v29 = vrot.slane %v3503_v56, 1 }
 0x16d   : > { %1593 = vmatpush.bf16.msrb.mxu1 %v2499_v31 }
 0x16f   : > { %2649 = vrot.lane.b32.xlu0 %v2648_v46, %s3003_s11  ;;  %2694 = vrot.lane.b32.xlu2 %v2693_v22, %s3004_s12  ;;  %v2678_v22 = vpack.i.bf16 %v3293_v7, %v3254_v37 }
 0x175   : > { %v2620_v42 = vpop.permute.xlu0 %2619 }
 0x176   : > { %v2622_v28 = vunpack.i.h.bf16 %v2620_v42  ;;  %v2621_v46 = vunpack.i.l.bf16 %v2620_v42 }
 0x177   : > { %2674 = vrot.lane.b32.xlu0 %v2673_v0, %s3004_s12  ;;  %2699 = vrot.lane.b32.xlu2 %v2673_v0, %s3005_s13  ;;  %v612_v0 = vsel %vm535_vm4, %v3232_v10, 0.0  ;;  %v2498_v10 = vld [vmem:[%s4298_s2 + $0x18] sm:$0xff] }
 0x178   : > { %v1004_v6 = vsel %vm997_vm3, %v612_v0, %v2621_v46  ;;  %v1005_v42 = vsel %vm997_vm3, %v3242_v20, %v2622_v28  ;;  %v674_v20 = vsel %vm672_vm2, %v669_v21, %v670_v29  ;;  %1594 = vmatpush.bf16.msrb.mxu1 %v2498_v10  ;;  %v675_v46 = vsel %vm672_vm2, %v668_v47, %v669_v21 }
 0x179   : > { %v614_v10 = vsel %vm535_vm4, %v3248_v33, 0.0 }
 0x17c   : > { %1595 = vmatpush.bf16.msrb.mxu1 %v2497_v38 }
 0x17f   : > { %2679 = vrot.lane.b32.xlu0 %v2678_v22, %s3003_s11  ;;  %2724 = vrot.lane.b32.xlu2 %v2723_v50, %s3003_s11 }
 0x181   : > { %v2625_v61 = vpop.permute.xlu1 %2624 }
 0x182   : > { %v2627_v3 = vunpack.i.h.bf16 %v2625_v61  ;;  %v2626_v5 = vunpack.i.l.bf16 %v2625_v61  ;;  %v738_v61 = vsel %vm639_vm1, %v674_v20, 0.0 }
 0x184   : > { %v3516_v45 = vsel %vm1030_vm5, %v1004_v6, %v2626_v5  ;;  %v3519_v50 = vsel %vm1030_vm5, %v1005_v42, %v2627_v3  ;;  %v2496_v3 = vld [vmem:[%s4298_s2 + $0x8] sm:$0xff]  ;;  %v2635_v5 = vpop.permute.xlu2 %2634  ;;  %v2708_v6 = vpack.i.bf16 %v3332_v41, %v3295_v8  ;;  %v2748_v42 = vpack.i.bf16 %v738_v61, %v675_v46 }
 0x185   : > { %v2703_v22 = vpack.i.bf16 %v3519_v50, %v3516_v45  ;;  %v2636_v20 = vunpack.i.l.bf16 %v2635_v5  ;;  %1596 = vmatpush.bf16.msrb.mxu1 %v2496_v3  ;;  %v655_v46 = vrot.slane %v3424_v16, 1  ;;  %v2510_v16 = vld [vmem:[%s4298_s2 + $0x78] sm:$0xff] }
 0x186   : > { %1679 = vmatpush.bf16.msrb.mxu2 %v2510_v16 }
 0x187   : > { %2704 = vrot.lane.b32.xlu0 %v2703_v22, %s3004_s12  ;;  %2729 = vrot.lane.b32.xlu2 %v2703_v22, %s3005_s13  ;;  %v2637_v22 = vunpack.i.h.bf16 %v2635_v5  ;;  %v688_v61 = vsel %vm672_vm2, %v655_v46, %v656_v12  ;;  %v2509_v12 = vld [vmem:[%s4298_s2 + $0x70] sm:$0xff]  ;;  %v671_v5 = vrot.slane %v3349_v58, 1 }
 0x189   : > { %v2630_v28 = vpop.permute.xlu1 %2629 }
 0x18a   : > { %v2632_v31 = vunpack.i.h.bf16 %v2630_v28  ;;  %v2631_v0 = vunpack.i.l.bf16 %v2630_v28  ;;  %v2495_v28 = vld [vmem:[%s4298_s2] sm:$0xff]  ;;  %1680 = vmatpush.bf16.msrb.mxu2 %v2509_v12 }
 0x18b   : > { %1597 = vmatpush.bf16.msrb.mxu1 %v2495_v28 }
 0x18c   : > { %v1006_v47 = vsel %vm997_vm3, %v614_v10, %v2631_v0  ;;  %v1007_v21 = vsel %vm997_vm3, %v3265_v49, %v2632_v31  ;;  %v689_v31 = vsel %vm672_vm2, %v654_v54, %v655_v46  ;;  %v724_v0 = vsel %vm639_vm1, %v688_v61, 0.0  ;;  %v2507_v54 = vld [vmem:[%s4298_s2 + $0x60] sm:$0xff] }
 0x18d   : > { %v3557_v38 = vsel %vm1030_vm5, %v1006_v47, %v2636_v20  ;;  %v3560_v33 = vsel %vm1030_vm5, %v1007_v21, %v2637_v22  ;;  %v2738_v3 = vpack.i.bf16 %v724_v0, %v689_v31  ;;  %v704_v10 = vsel %vm672_vm2, %v671_v5, %v640_v40  ;;  %v2512_v40 = vld [vmem:[%s4298_s2 + $0x88] sm:$0xff]  ;;  %v2511_v31 = vld [vmem:[%s4298_s2 + $0x80] sm:$0xff] }
 0x18e   : > { %v2733_v49 = vpack.i.bf16 %v3560_v33, %v3557_v38  ;;  %1681 = vmatpush.bf16.msrb.mxu2 %v2508_v23  ;;  %v673_v20 = vsel %vm672_vm2, %v670_v29, %v671_v5  ;;  %v740_v28 = vsel %vm639_vm1, %v704_v10, 0.0  ;;  %1774 = vmatpush.bf16.msrb.mxu0 %v2512_v40  ;;  %v2504_v29 = vld [vmem:[%s4298_s2 + $0x48] sm:$0xff]  ;;  %v2503_v0 = vld [vmem:[%s4298_s2 + $0x40] sm:$0xff] }
 0x18f   : > { %2709 = vrot.lane.b32.xlu0 %v2708_v6, %s3003_s11  ;;  %2749 = vrot.lane.b32.xlu2 %v2748_v42, %s3004_s12  ;;  %v2763_v6 = vpack.i.bf16 %v3457_v57, %v3416_v13  ;;  %v2506_v42 = vld [vmem:[%s4298_s2 + $0x58] sm:$0xff] }
 0x190   : > { %2532 = vmatpush.bf16.msra.mxu3 %v2512_v40 }
 0x191   : > { %v2655_v40 = vpop.permute.xlu1 %2654 }
 0x192   : > { %1682 = vmatpush.bf16.msrb.mxu2 %v2507_v54  ;;  %1775 = vmatpush.bf16.msrb.mxu0 %v2511_v31 }
 0x194   : > { %2533 = vmatpush.bf16.msra.mxu3 %v2511_v31 }
 0x196   : > { %1683 = vmatpush.bf16.msrb.mxu2 %v2506_v42 }
 0x197   : > { %2734 = vrot.lane.b32.xlu0 %v2733_v49, %s3004_s12 }
 0x19a   : > { %1684 = vmatpush.bf16.msrb.mxu2 %v2505_v26 }
 0x19e   : > { %1685 = vmatpush.bf16.msrb.mxu2 %v2504_v29 }
 0x19f   : > { %2739 = vrot.lane.b32.xlu0 %v2738_v3, %s3004_s12 }
 0x1a2   : > { %1686 = vmatpush.bf16.msrb.mxu2 %v2503_v0 }
 0x1a7   : > { %2759 = vrot.lane.b32.xlu0 %v2733_v49, %s3005_s13  ;;  %v2783_v49 = vpack.i.bf16 %v740_v28, %v673_v20  ;;  %v3648_v20 = vmax.f32 %v3226_v4, 0.0 }
 0x1a9   : > { %v558_v29 = vrot.slane %v3648_v20, 7 }
 0x1af   : > { %2764 = vrot.lane.b32.xlu0 %v2763_v6, %s3003_s11 }
 0x1b1   : > { %v2640_v21 = vpop.permute.xlu2 %2639 }
 0x1b2   : > { %v2642_v13 = vunpack.i.h.bf16 %v2640_v21  ;;  %v2641_v22 = vunpack.i.l.bf16 %v2640_v21 }
 0x1b4   : > { %v2423_v46 = vpack.c.bf16 %v2642_v13, %v2641_v22 }
 0x1b6   : > { %2424 = vmatmul.msk.bf16.vlgmr.msrb.gmra.mxu1 %vm2422_vm8, %v2423_v46 }
 0x1b7   : > { %2784 = vrot.lane.b32.xlu0 %v2783_v49, %s3004_s12 }
 0x1b9   : > { %v3621_v61 = vpop.permute.xlu2 %2664 }
 0x1c1   : > { %v2670_v16 = vpop.permute.xlu2 %2669 }
 0x1c2   : > { %v2672_v3 = vunpack.i.h.bf16 %v2670_v16  ;;  %v2671_v12 = vunpack.i.l.bf16 %v2670_v16 }
 0x1c4   : > { %v1288_v23 = vsel %vm1285_vm6, %v3367_v18, %v2671_v12  ;;  %v1289_v54 = vsel %vm1285_vm6, %v3370_v19, %v2672_v3 }
 0x1c5   : > { %v1353_v5 = vpack.c.bf16 %v1289_v54, %v1288_v23  ;;  %v560_v23 = vrot.slane %v3256_v39, 7 }
 0x1c7   : > { %1603 = vmatmul.bf16.gmra.mxu1 %v1353_v5 }
 0x1c9   : > { %v3633_v6 = vpop.permute.xlu2 %2694 }
 0x1d1   : > { %v3635_v42 = vpop.permute.xlu2 %2699 }
 0x1d2   : > { %v2702_v10 = vunpack.i.h.bf16 %v3635_v42  ;;  %v2701_v47 = vunpack.i.l.bf16 %v3635_v42  ;;  %v2696_v42 = vunpack.i.l.bf16 %v3633_v6 }
 0x1d4   : > { %v1290_v21 = vsel %vm1285_vm6, %v3405_v9, %v2701_v47  ;;  %v1291_v18 = vsel %vm1285_vm6, %v3408_v35, %v2702_v10  ;;  %v559_v9 = vrot.slane %v3259_v44, 7 }
 0x1d5   : > { %v1356_v19 = vpack.c.bf16 %v1291_v18, %v1290_v21 }
 0x1d6   : > { %v579_v4 = vsel %vm569_vm0, %v558_v29, %v559_v9 }
 0x1d7   : > { %1608 = vmatmul.bf16.gmra.mxu1 %v1356_v19  ;;  %v2657_v19 = vunpack.i.h.bf16 %v2655_v40 }
 0x1d9   : > { %v2645_v28 = vpop.permute.xlu0 %2644  ;;  %v3650_v26 = vpop.permute.xlu2 %2724 }
 0x1da   : > { %v2647_v46 = vunpack.i.h.bf16 %v2645_v28  ;;  %v2646_v49 = vunpack.i.l.bf16 %v2645_v28  ;;  %v2656_v28 = vunpack.i.l.bf16 %v2655_v40 }
 0x1dc   : > { %v1352_v31 = vpack.c.bf16 %v2647_v46, %v2646_v49  ;;  %v1318_v0 = vsel %vm1030_vm5, %v2641_v22, %v2646_v49  ;;  %v1319_v35 = vsel %vm1030_vm5, %v2642_v13, %v2647_v46  ;;  %v578_v46 = vsel %vm569_vm0, %v559_v9, %v560_v23 }
 0x1dd   : > { %v1351_v16 = vpack.c.bf16 %v1319_v35, %v1318_v0  ;;  %v628_v49 = vsel %vm535_vm4, %v579_v4, 0.0 }
 0x1de   : > { %2425 = vmatmul.msk.bf16.vlgmr.msrb.gmra.mxu0 %vm997_vm3, %v1352_v31  ;;  %v2660_v31 = vpop.permute.xlu1 %2659 }
 0x1df   : > { %1687 = vmatmul.bf16.vlgmr.msrb.gmra.mxu2 %v1351_v16 }
 0x1e1   : > { %v2650_v54 = vpop.permute.xlu0 %2649  ;;  %v3662_v5 = vpop.permute.xlu2 %2729 }
 0x1e2   : > { %v2652_v21 = vunpack.i.h.bf16 %v2650_v54  ;;  %v2651_v18 = vunpack.i.l.bf16 %v2650_v54  ;;  %v2732_v22 = vunpack.i.h.bf16 %v3662_v5  ;;  %v2731_v13 = vunpack.i.l.bf16 %v3662_v5 }
 0x1e4   : > { %v1021_v39 = vsel %vm997_vm3, %v578_v46, %v2652_v21  ;;  %v1020_v0 = vsel %vm997_vm3, %v628_v49, %v2651_v18  ;;  %v1292_v35 = vsel %vm1285_vm6, %v3447_v63, %v2731_v13  ;;  %v1293_v40 = vsel %vm1285_vm6, %v3450_v27, %v2732_v22 }
 0x1e5   : > { %v1359_v16 = vpack.c.bf16 %v1293_v40, %v1292_v35  ;;  %v3681_v9 = vsel %vm1030_vm5, %v1020_v0, %v2656_v28  ;;  %v3684_v4 = vsel %vm1030_vm5, %v1021_v39, %v2657_v19  ;;  %v561_v21 = vrot.slane %v3254_v37, 7 }
 0x1e6   : > { %v3688_v54 = vpack.i.bf16 %v3684_v4, %v3681_v9  ;;  %v562_v19 = vrot.slane %v3293_v7, 7  ;;  %v2662_v0 = vunpack.i.h.bf16 %v2660_v31  ;;  %v2661_v35 = vunpack.i.l.bf16 %v2660_v31  ;;  %v2685_v40 = vpop.permute.xlu1 %2684 }
 0x1e7   : > { %1613 = vmatmul.bf16.gmra.mxu1 %v1359_v16  ;;  %v2743_v16 = vpack.i.bf16 %v3478_v24, %v3334_v43  ;;  %v577_v37 = vsel %vm569_vm0, %v560_v23, %v561_v21  ;;  %v616_v7 = vsel %vm535_vm4, %v3287_v1, 0.0 }
 0x1e8   : > { %2719 = vrot.lane.b32.xlu1 %v3688_v54, %s3004_s12  ;;  %v630_v31 = vsel %vm535_vm4, %v577_v37, 0.0  ;;  %v1008_v23 = vsel %vm997_vm3, %v616_v7, %v2661_v35 }
 0x1e9   : > { %v2675_v63 = vpop.permute.xlu0 %2674 }
 0x1ea   : > { %v2677_v18 = vunpack.i.h.bf16 %v2675_v63  ;;  %v2676_v27 = vunpack.i.l.bf16 %v2675_v63  ;;  %v2667_v63 = vunpack.i.h.bf16 %v3621_v61 }
 0x1ec   : > { %v1355_v46 = vpack.c.bf16 %v2677_v18, %v2676_v27  ;;  %v1320_v28 = vsel %vm1030_vm5, %v2671_v12, %v2676_v27  ;;  %v1321_v49 = vsel %vm1030_vm5, %v2672_v3, %v2677_v18  ;;  %v2666_v12 = vunpack.i.l.bf16 %v3621_v61 }
 0x1ed   : > { %v1354_v39 = vpack.c.bf16 %v1321_v49, %v1320_v28  ;;  %v576_v3 = vsel %vm569_vm0, %v561_v21, %v562_v19  ;;  %v1009_v27 = vsel %vm997_vm3, %v3308_v17, %v2662_v0  ;;  %v2687_v28 = vunpack.i.h.bf16 %v2685_v40 }
 0x1ee   : > { %2426 = vmatmul.msk.bf16.gmra.mxu0 %vm997_vm3, %v1355_v46  ;;  %v2686_v49 = vunpack.i.l.bf16 %v2685_v40  ;;  %v3718_v1 = vsel %vm1030_vm5, %v1009_v27, %v2667_v63  ;;  %v2690_v40 = vpop.permute.xlu1 %2689  ;;  %v564_v27 = vrot.slane %v3332_v41, 7 }
 0x1ef   : > { %1692 = vmatmul.bf16.gmra.mxu2 %v1354_v39  ;;  %v3715_v39 = vsel %vm1030_vm5, %v1008_v23, %v2666_v12  ;;  %v563_v12 = vrot.slane %v3295_v8, 7  ;;  %v2778_v8 = vpack.i.bf16 %v3349_v58, %v3503_v56 }
 0x1f0   : > { %2744 = vrot.lane.b32.xlu1 %v2743_v16, %s3003_s11  ;;  %v2768_v17 = vpack.i.bf16 %v3718_v1, %v3715_v39 }
 0x1f1   : > { %v2680_v18 = vpop.permute.xlu0 %2679 }
 0x1f2   : > { %v2682_v61 = vunpack.i.h.bf16 %v2680_v18  ;;  %v2681_v46 = vunpack.i.l.bf16 %v2680_v18 }
 0x1f4   : > { %v1023_v21 = vsel %vm997_vm3, %v576_v3, %v2682_v61  ;;  %v1022_v16 = vsel %vm997_vm3, %v630_v31, %v2681_v46  ;;  %v467_v46 = vpop.f32.mrf.mxu0 }
 0x1f5   : > { %v3723_v37 = vsel %vm1030_vm5, %v1022_v16, %v2686_v49  ;;  %v3726_v35 = vsel %vm1030_vm5, %v1023_v21, %v2687_v28  ;;  %v2692_v28 = vunpack.i.h.bf16 %v2690_v40  ;;  %v2691_v49 = vunpack.i.l.bf16 %v2690_v40 }
 0x1f6   : > { %v3732_v0 = vpack.i.bf16 %v3726_v35, %v3723_v37  ;;  %v575_v21 = vsel %vm569_vm0, %v562_v19, %v563_v12  ;;  %v2715_v16 = vpop.permute.xlu1 %2714  ;;  %v3756_v40 = vmax.f32 %v467_v46, 0.0 }
 0x1f8   : > { %2769 = vrot.lane.b32.xlu1 %v2768_v17, %s3004_s12  ;;  %2754 = vrot.lane.b32.xlu2 %v3732_v0, %s3004_s12 }
 0x1f9   : > { %v2705_v63 = vpop.permute.xlu0 %2704 }
 0x1fa   : > { %v2707_v7 = vunpack.i.h.bf16 %v2705_v63  ;;  %v2706_v3 = vunpack.i.l.bf16 %v2705_v63  ;;  %v618_v63 = vsel %vm535_vm4, %v3322_v30, 0.0 }
 0x1fc   : > { %v1358_v31 = vpack.c.bf16 %v2707_v7, %v2706_v3  ;;  %v1322_v18 = vsel %vm1030_vm5, %v2701_v47, %v2706_v3  ;;  %v1323_v23 = vsel %vm1030_vm5, %v2702_v10, %v2707_v7  ;;  %v2697_v47 = vunpack.i.h.bf16 %v3633_v6 }
 0x1fd   : > { %v1357_v61 = vpack.c.bf16 %v1323_v23, %v1322_v18  ;;  %v3753_v10 = vmax.f32 %v3218_v60, 0.0  ;;  %v574_v60 = vsel %vm569_vm0, %v563_v12, %v564_v27  ;;  %v632_v6 = vsel %vm535_vm4, %v575_v21, 0.0 }
 0x1fe   : > { %2427 = vmatmul.msk.bf16.gmra.mxu0 %vm997_vm3, %v1358_v31  ;;  %v1010_v7 = vsel %vm997_vm3, %v618_v63, %v2691_v49  ;;  %v1011_v3 = vsel %vm997_vm3, %v3389_v48, %v2692_v28  ;;  %v2717_v18 = vunpack.i.h.bf16 %v2715_v16  ;;  %v2716_v23 = vunpack.i.l.bf16 %v2715_v16 }
 0x1ff   : > { %1697 = vmatmul.bf16.gmra.mxu2 %v1357_v61  ;;  %v3775_v52 = vsel %vm1030_vm5, %v1010_v7, %v2696_v42  ;;  %v3778_v53 = vsel %vm1030_vm5, %v1011_v3, %v2697_v47  ;;  %v659_v61 = vrot.slane %v3756_v40, 1  ;;  %v2727_v3 = vunpack.i.h.bf16 %v3650_v26 }
 0x200   : > { %2779 = vrot.lane.b32.xlu2 %v2778_v8, %s3003_s11  ;;  %2774 = vrot.lane.b32.xlu1 %v2773_v62, %s3004_s12  ;;  %v2803_v28 = vpack.i.bf16 %v3778_v53, %v3775_v52  ;;  %v660_v8 = vrot.slane %v3753_v10, 1 }
 0x201   : > { %v2710_v19 = vpop.permute.xlu0 %2709  ;;  %v685_v63 = vsel %vm672_vm2, %v658_v14, %v659_v61  ;;  %v2798_v14 = vpack.i.bf16 %v3756_v40, %v3461_v2 }
 0x202   : > { %v2712_v30 = vunpack.i.h.bf16 %v2710_v19  ;;  %v2711_v31 = vunpack.i.l.bf16 %v2710_v19  ;;  %v684_v47 = vsel %vm672_vm2, %v659_v61, %v660_v8  ;;  %v661_v61 = vrot.slane %v3648_v20, 1 }
 0x203   : > { %v728_v19 = vsel %vm639_vm1, %v684_v47, 0.0 }
 0x204   : > { %v1025_v62 = vsel %vm997_vm3, %v574_v60, %v2712_v30  ;;  %v1024_v12 = vsel %vm997_vm3, %v632_v6, %v2711_v31  ;;  %v2726_v30 = vunpack.i.l.bf16 %v3650_v26  ;;  %v2808_v31 = vpack.i.bf16 %v728_v19, %v685_v63 }
 0x205   : > { %v3784_v46 = vsel %vm1030_vm5, %v1024_v12, %v2716_v23  ;;  %v3787_v48 = vsel %vm1030_vm5, %v1025_v62, %v2717_v18  ;;  %v1013_v23 = vsel %vm997_vm3, %v3434_v15, %v2727_v3 }
 0x206   : > { %v3793_v49 = vpack.i.bf16 %v3787_v48, %v3784_v46 }
 0x208   : > { %2804 = vrot.lane.b32.xlu2 %v2803_v28, %s3004_s12  ;;  %2789 = vrot.lane.b32.xlu0 %v3793_v49, %s3004_s12 }
 0x209   : > { %2794 = vrot.lane.b32.xlu1 %v2768_v17, %s3005_s13  ;;  %v2735_v21 = vpop.permute.xlu0 %2734 }
 0x20a   : > { %v2737_v42 = vunpack.i.h.bf16 %v2735_v21  ;;  %v2736_v16 = vunpack.i.l.bf16 %v2735_v21  ;;  %v682_v21 = vsel %vm672_vm2, %v661_v61, %v662_v51  ;;  %v2750_v51 = vpop.permute.xlu2 %2749 }
 0x20c   : > { %v1361_v60 = vpack.c.bf16 %v2737_v42, %v2736_v16  ;;  %v1324_v6 = vsel %vm1030_vm5, %v2731_v13, %v2736_v16  ;;  %v1325_v17 = vsel %vm1030_vm5, %v2732_v22, %v2737_v42  ;;  %v620_v22 = vsel %vm535_vm4, %v3394_v55, 0.0 }
 0x20d   : > { %v1360_v7 = vpack.c.bf16 %v1325_v17, %v1324_v6  ;;  %v1012_v26 = vsel %vm997_vm3, %v620_v22, %v2726_v30  ;;  %v2823_v55 = vpack.i.bf16 %v3648_v20, %v3753_v10  ;;  %v730_v6 = vsel %vm639_vm1, %v682_v21, 0.0 }
 0x20e   : > { %2428 = vmatmul.msk.bf16.gmra.mxu0 %vm997_vm3, %v1361_v60  ;;  %v683_v60 = vsel %vm672_vm2, %v660_v8, %v661_v61 }
 0x20f   : > { %1702 = vmatmul.bf16.gmra.mxu2 %v1360_v7  ;;  %v2833_v17 = vpack.i.bf16 %v730_v6, %v683_v60  ;;  %v2752_v60 = vunpack.i.h.bf16 %v2750_v51  ;;  %v2751_v6 = vunpack.i.l.bf16 %v2750_v51 }
 0x210   : > { %2819 = vrot.lane.b32.xlu0 %v2803_v28, %s3005_s13  ;;  %2809 = vrot.lane.b32.xlu2 %v2808_v31, %s3004_s12 }
 0x211   : > { %2799 = vrot.lane.b32.xlu1 %v2798_v14, %s3003_s11  ;;  %v2740_v5 = vpop.permute.xlu0 %2739 }
 0x212   : > { %v2742_v13 = vunpack.i.h.bf16 %v2740_v5  ;;  %v2741_v18 = vunpack.i.l.bf16 %v2740_v5 }
 0x214   : > { %v3829_v62 = vsel %vm1030_vm5, %v1012_v26, %v2741_v18  ;;  %v3832_v12 = vsel %vm1030_vm5, %v1013_v23, %v2742_v13  ;;  %v565_v26 = vrot.slane %v3334_v43, 7 }
 0x215   : > { %v3837_v28 = vpack.i.bf16 %v3832_v12, %v3829_v62 }
 0x216   : > { %v573_v43 = vsel %vm569_vm0, %v564_v27, %v565_v26 }
 0x218   : > { %2824 = vrot.lane.b32.xlu0 %v2823_v55, %s3003_s11  ;;  %s2953_s11 = scalar_lea.hbm %s4300_s4, 512 }
 0x219   : > { %2829 = vrot.lane.b32.xlu1 %v3837_v28, %s3004_s12  ;;  %v3844_v15 = vpop.permute.xlu0 %2759  ;;  %p2955_p1 = scmp.lt.s32.totalorder %s2953_s11, %s2949_s19 }
 0x21a   : > { %v2762_v47 = vunpack.i.h.bf16 %v3844_v15  ;;  %v2761_v42 = vunpack.i.l.bf16 %v3844_v15 }
 0x21b   : > { %p2956_p3 = por %p2955_p1, %p2954_p0 }
 0x21c   : > { %v1294_v16 = vsel %vm1285_vm6, %v3516_v45, %v2761_v42  ;;  %v1295_v63 = vsel %vm1285_vm6, %v3519_v50, %v2762_v47  ;;  %v566_v45 = vrot.slane %v3478_v24, 7  ;;  %v567_v50 = vrot.slane %v3503_v56, 7 }
 0x21d   : > { %v1362_v44 = vpack.c.bf16 %v1295_v63, %v1294_v16  ;;  %p2957_p4 = pnand %p2956_p3, %p2952_p13 }
 0x21e   : > { %v571_v8 = vsel %vm569_vm0, %v566_v45, %v567_v50  ;;  %v570_v24 = vsel %vm569_vm0, %v567_v50, %v568_v59 }
 0x21f   : > { %1618 = vmatmul.bf16.gmra.mxu1 %v1362_v44  ;;  %v636_v56 = vsel %vm535_vm4, %v571_v8, 0.0  ;;  %v572_v44 = vsel %vm569_vm0, %v565_v26, %v566_v45 }
 0x221   : > { %2834 = vrot.lane.b32.xlu1 %v2833_v17, %s3004_s12  ;;  %v3861_v19 = vpop.permute.xlu0 %2764  ;;  %v634_v17 = vsel %vm535_vm4, %v573_v43, 0.0 }
 0x229   : > { %v2785_v3 = vpop.permute.xlu0 %2784 }
 0x22a   : > { %v2787_v13 = vunpack.i.h.bf16 %v2785_v3  ;;  %v2786_v18 = vunpack.i.l.bf16 %v2785_v3 }
 0x252   : > { %v3863_v7 = vpop.permute.xlu2 %2754 }
 0x253   : > { %v2757_v51 = vunpack.i.h.bf16 %v3863_v7  ;;  %v2756_v45 = vunpack.i.l.bf16 %v3863_v7 }
 0x25a   : > { %v3869_v34 = vpop.permute.xlu1 %2719  ;;  %v2780_v30 = vpop.permute.xlu2 %2779 }
 0x25b   : > { %v2722_v14 = vunpack.i.h.bf16 %v3869_v34  ;;  %v2721_v31 = vunpack.i.l.bf16 %v3869_v34  ;;  %v2782_v5 = vunpack.i.h.bf16 %v2780_v30  ;;  %v2781_v22 = vunpack.i.l.bf16 %v2780_v30 }
 0x25c   : > { %v3006_v30 = vmov 0.0  }
 0x25d   : > { %v1382_v23 = vpack.c.bf16 %v2722_v14, %v2721_v31  ;;  %v1029_v61 = vsel %vm997_vm3, %v570_v24, %v2782_v5  ;;  %v1028_v55 = vsel %vm997_vm3, %v636_v56, %v2781_v22 }
 0x25e   : > { %v1061_v15 = vsel %vm1030_vm5, %v1028_v55, %v2786_v18  ;;  %v1062_v58 = vsel %vm1030_vm5, %v1029_v61, %v2787_v13  ;;  %v1385_v18 = vpack.c.bf16 %v2757_v51, %v2756_v45  ;;  %v2767_v61 = vunpack.i.h.bf16 %v3861_v19 }
 0x25f   : > { %2435 = vmatmul.msk.bf16.vlgmr.msra.gmra.mxu3 %vm997_vm3, %v1382_v23  ;;  %v3889_v59 = vpack.i.bf16 %v1062_v58, %v1061_v15  ;;  %v2766_v55 = vunpack.i.l.bf16 %v3861_v19 }
 0x261   : > { %2849 = vrot.lane.b32.xlu1 %v3889_v59, %s3004_s12 }
 0x262   : > { %v2745_v21 = vpop.permute.xlu1 %2744 }
 0x263   : > { %v2747_v16 = vunpack.i.h.bf16 %v2745_v21  ;;  %v2746_v63 = vunpack.i.l.bf16 %v2745_v21  ;;  %v1015_v21 = vsel %vm997_vm3, %v3498_v36, %v2767_v61 }
 0x265   : > { %v1027_v50 = vsel %vm997_vm3, %v572_v44, %v2747_v16  ;;  %v1026_v3 = vsel %vm997_vm3, %v634_v17, %v2746_v63  ;;  %v2805_v16 = vpop.permute.xlu2 %2804 }
 0x266   : > { %v3904_v41 = vsel %vm1030_vm5, %v1026_v3, %v2751_v6  ;;  %v3907_v27 = vsel %vm1030_vm5, %v1027_v50, %v2752_v60  ;;  %v2807_v60 = vunpack.i.h.bf16 %v2805_v16  ;;  %v2806_v6 = vunpack.i.l.bf16 %v2805_v16 }
 0x267   : > { %v3911_v8 = vpack.i.bf16 %v3907_v27, %v3904_v41 }
 0x269   : > { %2814 = vrot.lane.b32.xlu2 %v3911_v8, %s3004_s12  ;;  %1252 = vrot.lane.b32.xlu1 %v3006_v30, %s3004_s12  ;;  %v1367_v30 = vpack.c.bf16 %v2807_v60, %v2806_v6 }
 0x26a   : > { %v2770_v5 = vpop.permute.xlu1 %2769 }
 0x26b   : > { %v2772_v22 = vunpack.i.h.bf16 %v2770_v5  ;;  %v2771_v13 = vunpack.i.l.bf16 %v2770_v5 }
 0x26d   : > { %v1364_v24 = vpack.c.bf16 %v2772_v22, %v2771_v13  ;;  %v1326_v56 = vsel %vm1030_vm5, %v2761_v42, %v2771_v13  ;;  %v1327_v26 = vsel %vm1030_vm5, %v2762_v47, %v2772_v22  ;;  %v622_v42 = vsel %vm535_vm4, %v3438_v32, 0.0  ;;  %v2810_v61 = vpop.permute.xlu2 %2809 }
 0x26e   : > { %v1363_v23 = vpack.c.bf16 %v1327_v26, %v1326_v56  ;;  %v1014_v43 = vsel %vm997_vm3, %v622_v42, %v2766_v55  ;;  %v555_v22 = vrot.slane %v3461_v2, 7 }
 0x26f   : > { %2429 = vmatmul.msk.bf16.gmra.mxu0 %vm997_vm3, %v1364_v24  ;;  %2436 = vmatmul.msk.bf16.gmra.mxu3 %vm997_vm3, %v1385_v18 }
 0x270   : > { %1707 = vmatmul.bf16.gmra.mxu2 %v1363_v23  ;;  %v583_v2 = vsel %vm569_vm0, %v554_v11, %v555_v22 }
 0x271   : > { %2839 = vrot.lane.b32.xlu2 %v3837_v28, %s3005_s13 }
 0x272   : > { %v2775_v15 = vpop.permute.xlu1 %2774 }
 0x273   : > { %v2777_v58 = vunpack.i.h.bf16 %v2775_v15  ;;  %v2776_v47 = vunpack.i.l.bf16 %v2775_v15 }
 0x275   : > { %v3937_v63 = vsel %vm1030_vm5, %v1014_v43, %v2776_v47  ;;  %v3940_v19 = vsel %vm1030_vm5, %v1015_v21, %v2777_v58  ;;  %v2812_v58 = vunpack.i.h.bf16 %v2810_v61  ;;  %v2811_v47 = vunpack.i.l.bf16 %v2810_v61 }
 0x276   : > { %v2843_v28 = vpack.i.bf16 %v3940_v19, %v3937_v63  ;;  %v624_v43 = vsel %vm535_vm4, %v583_v2, 0.0 }
 0x278   : > { %2844 = vrot.lane.b32.xlu0 %v2843_v28, %s3004_s12 }
 0x279   : > { %2854 = vrot.lane.b32.xlu2 %v2843_v28, %s3005_s13 }
 0x27a   : > { %v3946_v32 = vpop.permute.xlu0 %2789 }
 0x27b   : > { %v2792_v36 = vunpack.i.h.bf16 %v3946_v32  ;;  %v2791_v44 = vunpack.i.l.bf16 %v3946_v32  ;;  %v2795_v17 = vpop.permute.xlu1 %2794 }
 0x27c   : > { %v2797_v50 = vunpack.i.h.bf16 %v2795_v17  ;;  %v2796_v3 = vunpack.i.l.bf16 %v2795_v17  ;;  %v2514_v17 = vld [vmem:[%s4299_s3 + $0x8] sm:$0xff] }
 0x27d   : > { %v1388_v5 = vpack.c.bf16 %v2792_v36, %v2791_v44  ;;  %2007 = vmatpush.bf16.msrb.mxu3 %v2514_v17 }
 0x27e   : > { %v1296_v13 = vsel %vm1285_vm6, %v3557_v38, %v2796_v3  ;;  %v1297_v18 = vsel %vm1285_vm6, %v3560_v33, %v2797_v50  ;;  %v1328_v24 = vsel %vm1030_vm5, %v2796_v3, %v2806_v6  ;;  %v1329_v26 = vsel %vm1030_vm5, %v2797_v50, %v2807_v60 }
 0x27f   : > { %2430 = vmatmul.msk.bf16.gmra.mxu0 %vm997_vm3, %v1367_v30  ;;  %2437 = vmatmul.msk.bf16.gmra.mxu3 %vm997_vm3, %v1388_v5  ;;  %v1365_v56 = vpack.c.bf16 %v1297_v18, %v1296_v13  ;;  %v1366_v23 = vpack.c.bf16 %v1329_v26, %v1328_v24  ;;  %v556_v38 = vrot.slane %v3756_v40, 7  ;;  %v557_v26 = vrot.slane %v3753_v10, 7 }
 0x281   : > { %1623 = vmatmul.bf16.gmra.mxu1 %v1365_v56  ;;  %1712 = vmatmul.bf16.gmra.mxu2 %v1366_v23  ;;  %v582_v21 = vsel %vm569_vm0, %v555_v22, %v556_v38  ;;  %v580_v10 = vsel %vm569_vm0, %v557_v26, %v558_v29 }
 0x282   : > { %v2820_v55 = vpop.permute.xlu0 %2819 }
 0x283   : > { %v2800_v33 = vpop.permute.xlu1 %2799  ;;  %v2822_v28 = vunpack.i.h.bf16 %v2820_v55  ;;  %v2821_v60 = vunpack.i.l.bf16 %v2820_v55 }
 0x284   : > { %v2802_v15 = vunpack.i.h.bf16 %v2800_v33  ;;  %v2801_v42 = vunpack.i.l.bf16 %v2800_v33 }
 0x285   : > { %v1298_v5 = vsel %vm1285_vm6, %v3715_v39, %v2821_v60  ;;  %v1299_v22 = vsel %vm1285_vm6, %v3718_v1, %v2822_v28  ;;  %v581_v39 = vsel %vm569_vm0, %v556_v38, %v557_v26 }
 0x286   : > { %v1016_v16 = vsel %vm997_vm3, %v624_v43, %v2801_v42  ;;  %v1017_v57 = vsel %vm997_vm3, %v582_v21, %v2802_v15  ;;  %v1368_v23 = vpack.c.bf16 %v1299_v22, %v1298_v5  ;;  %v626_v55 = vsel %vm535_vm4, %v581_v39, 0.0  ;;  %v2513_v21 = vld [vmem:[%s4299_s3] sm:$0xff] }
 0x287   : > { %v3975_v11 = vsel %vm1030_vm5, %v1016_v16, %v2811_v47  ;;  %v3978_v40 = vsel %vm1030_vm5, %v1017_v57, %v2812_v58  ;;  %2008 = vmatpush.bf16.msrb.mxu3 %v2513_v21 }
 0x288   : > { %v2863_v6 = vpack.i.bf16 %v3978_v40, %v3975_v11 }
 0x28a   : > { %2864 = vrot.lane.b32.xlu2 %v2863_v6, %s3005_s13  ;;  %2859 = vrot.lane.b32.xlu0 %v2863_v6, %s3004_s12  ;;  %v2825_v13 = vpop.permute.xlu0 %2824 }
 0x28b   : > { %v2830_v50 = vpop.permute.xlu1 %2829  ;;  %v2827_v2 = vunpack.i.h.bf16 %v2825_v13  ;;  %v2826_v33 = vunpack.i.l.bf16 %v2825_v13 }
 0x28c   : > { %v2832_v3 = vunpack.i.h.bf16 %v2830_v50  ;;  %v2831_v30 = vunpack.i.l.bf16 %v2830_v50 }
 0x28d   : > { %v1019_v58 = vsel %vm997_vm3, %v580_v10, %v2827_v2  ;;  %v1018_v38 = vsel %vm997_vm3, %v626_v55, %v2826_v33 }
 0x28e   : > { %v1370_v18 = vpack.c.bf16 %v2832_v3, %v2831_v30  ;;  %v1330_v24 = vsel %vm1030_vm5, %v2821_v60, %v2831_v30  ;;  %v1331_v56 = vsel %vm1030_vm5, %v2822_v28, %v2832_v3  ;;  %v1777_v28 = vpop.f32.mrf.mxu0 }
 0x28f   : > { %v1369_v61 = vpack.c.bf16 %v1331_v56, %v1330_v24 }
 0x290   : > { %2431 = vmatmul.msk.bf16.gmra.mxu0 %vm997_vm3, %v1370_v18 }
 0x291   : > { %1628 = vmatmul.bf16.gmra.mxu1 %v1368_v23  ;;  %1717 = vmatmul.bf16.gmra.mxu2 %v1369_v61 }
 0x292   : > { %2879 = vrot.lane.b32.xlu2 %v3688_v54, %s3005_s13 }
 0x293   : > { %v2835_v1 = vpop.permute.xlu1 %2834 }
 0x294   : > { %v2837_v15 = vunpack.i.h.bf16 %v2835_v1  ;;  %v2836_v42 = vunpack.i.l.bf16 %v2835_v1 }
 0x296   : > { %v4008_v47 = vsel %vm1030_vm5, %v1018_v38, %v2836_v42  ;;  %v4011_v54 = vsel %vm1030_vm5, %v1019_v58, %v2837_v15  ;;  %v1779_v24 = vpop.f32.mrf.mxu0 }
 0x297   : > { %v2873_v20 = vpack.i.bf16 %v4011_v54, %v4008_v47 }
 0x299   : > { %2874 = vrot.lane.b32.xlu1 %v2873_v20, %s3005_s13  ;;  %2869 = vrot.lane.b32.xlu0 %v2873_v20, %s3004_s12 }
 0x29a   : > { %2894 = vrot.lane.b32.xlu2 %v3911_v8, %s3005_s13  ;;  %v1688_v8 = vpop.f32.mrf.mxu2 }
 0x29e   : > { %v1782_v33 = vpop.f32.mrf.mxu0 }
 0x2a1   : > { %2889 = vrot.lane.b32.xlu1 %v3793_v49, %s3005_s13  ;;  %2884 = vrot.lane.b32.xlu0 %v3732_v0, %s3005_s13  ;;  %v1599_v0 = vpop.f32.mrf.mxu1 }
 0x2a2   : > { %v1690_v50 = vpop.f32.mrf.mxu2  ;;  %v1689_v58 = vadd.f32 %v1688_v8, %v1599_v0 }
 0x2a6   : > { %v1784_v38 = vpop.f32.mrf.mxu0 }
 0x2a9   : > { %2899 = vrot.lane.b32.xlu0 %v3889_v59, %s3005_s13  ;;  %v1601_v22 = vpop.f32.mrf.mxu1  ;;  %s2251_s13 = sshll.u32 %s3120_s7, 8 }
 0x2aa   : > { %s4192_s26 = scalar_lea.vmem [#allocation5], %s2251_s13 }
 0x2ab   : > { %s2167_s29 = sshll.u32 %s4192_s26, 4  ;;  %s2168_s29 = int_to_ptr.vmem [resolvable:$true] %s2167_s29 }
 0x2b1   : > { %v1604_v61 = vpop.f32.mrf.mxu1 }
 0x2c3   : > { %v4025_v25 = vpop.permute.xlu2 %2814 }
 0x2c4   : > { %v2817_v29 = vunpack.i.h.bf16 %v4025_v25  ;;  %v2816_v43 = vunpack.i.l.bf16 %v4025_v25 }
 0x2c6   : > { %v1391_v49 = vpack.c.bf16 %v2817_v29, %v2816_v43 }
 0x2c8   : > { %2438 = vmatmul.msk.bf16.gmra.mxu3 %vm997_vm3, %v1391_v49 }
 0x2cb   : > { %v2840_v59 = vpop.permute.xlu2 %2839 }
 0x2cc   : > { %v2842_v16 = vunpack.i.h.bf16 %v2840_v59  ;;  %v2841_v57 = vunpack.i.l.bf16 %v2840_v59 }
 0x2ce   : > { %v1300_v60 = vsel %vm1285_vm6, %v3775_v52, %v2841_v57  ;;  %v1301_v6 = vsel %vm1285_vm6, %v3778_v53, %v2842_v16  ;;  %v1693_v52 = vpop.f32.mrf.mxu2 }
 0x2cf   : > { %v1371_v17 = vpack.c.bf16 %v1301_v6, %v1300_v60 }
 0x2d1   : > { %1633 = vmatmul.bf16.gmra.mxu1 %v1371_v17 }
 0x2d3   : > { %v2850_v3 = vpop.permute.xlu1 %2849  ;;  %v4041_v13 = vpop.permute.xlu2 %2854 }
 0x2d4   : > { %v2852_v30 = vunpack.i.h.bf16 %v2850_v3  ;;  %v2851_v5 = vunpack.i.l.bf16 %v2850_v3  ;;  %v2857_v56 = vunpack.i.h.bf16 %v4041_v13  ;;  %v2856_v26 = vunpack.i.l.bf16 %v4041_v13 }
 0x2d6   : > { %v1394_v18 = vpack.c.bf16 %v2852_v30, %v2851_v5  ;;  %v1302_v53 = vsel %vm1285_vm6, %v3829_v62, %v2856_v26  ;;  %v1303_v23 = vsel %vm1285_vm6, %v3832_v12, %v2857_v56  ;;  %v1695_v55 = vpop.f32.mrf.mxu2  ;;  %v1606_v62 = vpop.f32.mrf.mxu1  ;;  %v1691_v12 = vadd.f32 %v1690_v50, %v1601_v22 }
 0x2d7   : > { %v1374_v2 = vpack.c.bf16 %v1303_v23, %v1302_v53 }
 0x2d8   : > { %2439 = vmatmul.msk.bf16.gmra.mxu3 %vm997_vm3, %v1394_v18  ;;  %v1780_v17 = vadd.f32 %v1779_v24, %v1691_v12  ;;  %v1778_v18 = vadd.f32 %v1777_v28, %v1689_v58 }
 0x2da   : > { %v1857_v23 = vmax.f32 %v1778_v18, 0.0 }
 0x2db   : > { %v4050_v39 = vpop.permute.xlu1 %1252 }
 0x2dc   : > { %v1397_v10 = vpack.c.bf16 %v4050_v39, %v4050_v39 }
 0x2de   : > { %v1698_v50 = vpop.f32.mrf.mxu2  ;;  %v1609_v53 = vpop.f32.mrf.mxu1 }
 0x2e1   : > { %1638 = vmatmul.bf16.gmra.mxu1 %v1374_v2 }
 0x2e4   : > { %v4052_v1 = vpop.permute.xlu2 %2864 }
 0x2e5   : > { %v2867_v15 = vunpack.i.h.bf16 %v4052_v1  ;;  %v2866_v42 = vunpack.i.l.bf16 %v4052_v1 }
 0x2e6   : > { %v1700_v58 = vpop.f32.mrf.mxu2 }
 0x2e7   : > { %v1304_v60 = vsel %vm1285_vm6, %v3937_v63, %v2866_v42  ;;  %v1305_v6 = vsel %vm1285_vm6, %v3940_v19, %v2867_v15  ;;  %v1858_v63 = vmax.f32 %v1780_v17, 0.0  ;;  %v1787_v19 = vpop.f32.mrf.mxu0 }
 0x2e8   : > { %2440 = vmatmul.msk.bf16.gmra.mxu3 %vm997_vm3, %v1397_v10  ;;  %v1377_v13 = vpack.c.bf16 %v1305_v6, %v1304_v60  ;;  %v1611_v60 = vpop.f32.mrf.mxu1 }
 0x2e9   : > { %v1889_v10 = vpack.c.bf16 %v1858_v63, %v1857_v23  ;;  %v1699_v23 = vadd.f32 %v1698_v50, %v1609_v53 }
 0x2ea   : > { %v2845_v20 = vpop.permute.xlu0 %2844 }
 0x2eb   : > { %v2847_v21 = vunpack.i.h.bf16 %v2845_v20  ;;  %v2846_v49 = vunpack.i.l.bf16 %v2845_v20  ;;  %v1696_v20 = vadd.f32 %v1695_v55, %v1606_v62 }
 0x2ec   : > { %v4059_v59 = vpop.permute.xlu2 %2879 }
 0x2ed   : > { %v1373_v3 = vpack.c.bf16 %v2847_v21, %v2846_v49  ;;  %v1332_v8 = vsel %vm1030_vm5, %v2841_v57, %v2846_v49  ;;  %v1333_v0 = vsel %vm1030_vm5, %v2842_v16, %v2847_v21  ;;  %v1694_v21 = vadd.f32 %v1693_v52, %v1604_v61 }
 0x2ee   : > { %v1372_v22 = vpack.c.bf16 %v1333_v0, %v1332_v8  ;;  %v1703_v63 = vpop.f32.mrf.mxu2  ;;  %v2881_v1 = vunpack.i.l.bf16 %v4059_v59 }
 0x2ef   : > { %2432 = vmatmul.msk.bf16.gmra.mxu0 %vm997_vm3, %v1373_v3  ;;  %v1785_v3 = vadd.f32 %v1784_v38, %v1696_v20  ;;  %v1701_v38 = vadd.f32 %v1700_v58, %v1611_v60  ;;  %v1788_v58 = vadd.f32 %v1787_v19, %v1699_v23  ;;  %v4103_v60 = vpop.f32.mrf.mxu3 }
 0x2f0   : > { %1722 = vmatmul.bf16.gmra.mxu2 %v1372_v22  ;;  %v1783_v22 = vadd.f32 %v1782_v33, %v1694_v21  ;;  %v1614_v61 = vpop.f32.mrf.mxu1  ;;  %v1308_v23 = vsel %vm1285_vm6, %v4008_v47, %v2881_v1 }
 0x2f1   : > { %1643 = vmatmul.bf16.gmra.mxu1 %v1377_v13  ;;  %v1860_v18 = vmax.f32 %v1785_v3, 0.0 }
 0x2f2   : > { %v1859_v55 = vmax.f32 %v1783_v22, 0.0  ;;  %v1861_v22 = vmax.f32 %v1788_v58, 0.0  ;;  %v1340_v58 = vsel %vm1030_vm5, %v2881_v1, %v2756_v45 }
 0x2f4   : > { %v4072_v2 = vpop.permute.xlu2 %2894  ;;  %v1890_v52 = vpack.c.bf16 %v1860_v18, %v1859_v55 }
 0x2f5   : > { %v2897_v24 = vunpack.i.h.bf16 %v4072_v2  ;;  %v2896_v57 = vunpack.i.l.bf16 %v4072_v2 }
 0x2f6   : > { %v1705_v21 = vpop.f32.mrf.mxu2 }
 0x2f7   : > { %v4079_v16 = vsel %vm1030_vm5, %v2896_v57, %v2851_v5  ;;  %v4084_v28 = vsel %vm1030_vm5, %v2897_v24, %v2852_v30  ;;  %v1789_v5 = vpop.f32.mrf.mxu0  ;;  %v4109_v55 = vpop.f32.mrf.mxu3 }
 0x2f8   : > { %2449 = vmatmul.msk.bf16.vlgmr.msrb.gmra.mxu3 %vm997_vm3, %v1889_v10  ;;  %v1393_v12 = vpack.c.bf16 %v4084_v28, %v4079_v16  ;;  %v219_v28 = vld [vmem:[%s3124_s14] sm:$0xff]  }
 0x2fc   : > { %v2860_v49 = vpop.permute.xlu0 %2859 }
 0x2fd   : > { %v2862_v6 = vunpack.i.h.bf16 %v2860_v49  ;;  %v2861_v17 = vunpack.i.l.bf16 %v2860_v49 }
 0x2ff   : > { %v1376_v8 = vpack.c.bf16 %v2862_v6, %v2861_v17  ;;  %v1334_v0 = vsel %vm1030_vm5, %v2856_v26, %v2861_v17  ;;  %v1335_v30 = vsel %vm1030_vm5, %v2857_v56, %v2862_v6  ;;  %v1792_v62 = vpop.f32.mrf.mxu0  ;;  %v1790_v6 = vadd.f32 %v1789_v5, %v1701_v38 }
 0x300   : > { %v1375_v13 = vpack.c.bf16 %v1335_v30, %v1334_v0  ;;  %v1616_v30 = vpop.f32.mrf.mxu1  ;;  %v1704_v38 = vadd.f32 %v1703_v63, %v1614_v61 }
 0x301   : > { %2433 = vmatmul.msk.bf16.gmra.mxu0 %vm997_vm3, %v1376_v8  ;;  %v1706_v19 = vadd.f32 %v1705_v21, %v1616_v30 }
 0x302   : > { %1727 = vmatmul.bf16.gmra.mxu2 %v1375_v13  ;;  %v1708_v13 = vpop.f32.mrf.mxu2 }
 0x308   : > { %2450 = vmatmul.msk.bf16.gmra.mxu3 %vm997_vm3, %v1890_v52 }
 0x30b   : > { %v2875_v10 = vpop.permute.xlu1 %2874  ;;  %v2870_v20 = vpop.permute.xlu0 %2869 }
 0x30c   : > { %v2877_v26 = vunpack.i.h.bf16 %v2875_v10  ;;  %v2876_v49 = vunpack.i.l.bf16 %v2875_v10  ;;  %v2872_v56 = vunpack.i.h.bf16 %v2870_v20  ;;  %v2871_v33 = vunpack.i.l.bf16 %v2870_v20 }
 0x30e   : > { %v1379_v17 = vpack.c.bf16 %v2872_v56, %v2871_v33  ;;  %v1306_v3 = vsel %vm1285_vm6, %v3975_v11, %v2876_v49  ;;  %v1307_v8 = vsel %vm1285_vm6, %v3978_v40, %v2877_v26  ;;  %v1336_v50 = vsel %vm1030_vm5, %v2866_v42, %v2871_v33  ;;  %v1794_v40 = vpop.f32.mrf.mxu0  ;;  %v1710_v33 = vpop.f32.mrf.mxu2 }
 0x30f   : > { %v1380_v0 = vpack.c.bf16 %v1307_v8, %v1306_v3  ;;  %v1337_v53 = vsel %vm1030_vm5, %v2867_v15, %v2872_v56  ;;  %v1862_v11 = vmax.f32 %v1790_v6, 0.0  ;;  %v2882_v42 = vunpack.i.h.bf16 %v4059_v59  ;;  %v1619_v15 = vpop.f32.mrf.mxu1  ;;  %v4121_v3 = vpop.f32.mrf.mxu3 }
 0x310   : > { %v1378_v5 = vpack.c.bf16 %v1337_v53, %v1336_v50  ;;  %v1338_v20 = vsel %vm1030_vm5, %v2876_v49, %v2721_v31  ;;  %v1339_v59 = vsel %vm1030_vm5, %v2877_v26, %v2722_v14  ;;  %v1795_v56 = vadd.f32 %v1794_v40, %v1706_v19 }
 0x311   : > { %1648 = vmatmul.bf16.gmra.mxu1 %v1380_v0  ;;  %2434 = vmatmul.msk.bf16.gmra.mxu0 %vm997_vm3, %v1379_v17  ;;  %v1891_v18 = vpack.c.bf16 %v1862_v11, %v1861_v22  ;;  %v1309_v10 = vsel %vm1285_vm6, %v4011_v54, %v2882_v42  ;;  %v1793_v6 = vadd.f32 %v1792_v62, %v1704_v38 }
 0x312   : > { %1732 = vmatmul.bf16.gmra.mxu2 %v1378_v5  ;;  %v1383_v21 = vpack.c.bf16 %v1309_v10, %v1308_v23  ;;  %v1381_v17 = vpack.c.bf16 %v1339_v59, %v1338_v20  ;;  %v1864_v63 = vmax.f32 %v1795_v56, 0.0  ;;  %v1709_v50 = vadd.f32 %v1708_v13, %v1619_v15 }
 0x313   : > { %v1863_v61 = vmax.f32 %v1793_v6, 0.0  ;;  %v2885_v8 = vpop.permute.xlu0 %2884  ;;  %v1341_v5 = vsel %vm1030_vm5, %v2882_v42, %v2757_v51  ;;  %v2890_v38 = vpop.permute.xlu1 %2889 }
 0x314   : > { %v2887_v31 = vunpack.i.h.bf16 %v2885_v8  ;;  %v2886_v49 = vunpack.i.l.bf16 %v2885_v8  ;;  %v2892_v45 = vunpack.i.h.bf16 %v2890_v38  ;;  %v2891_v1 = vunpack.i.l.bf16 %v2890_v38 }
 0x315   : > { %v1892_v0 = vpack.c.bf16 %v1864_v63, %v1863_v61 }
 0x316   : > { %v1797_v52 = vpop.f32.mrf.mxu0  ;;  %v1713_v34 = vpop.f32.mrf.mxu2  ;;  %v1310_v62 = vsel %vm1285_vm6, %v3681_v9, %v2886_v49  ;;  %v1311_v53 = vsel %vm1285_vm6, %v3684_v4, %v2887_v31  ;;  %v1313_v20 = vsel %vm1285_vm6, %v3726_v35, %v2892_v45  ;;  %v1342_v56 = vsel %vm1030_vm5, %v2886_v49, %v2791_v44 }
 0x317   : > { %v1621_v47 = vpop.f32.mrf.mxu1  ;;  %v4134_v11 = vpop.f32.mrf.mxu3  ;;  %v1386_v22 = vpack.c.bf16 %v1311_v53, %v1310_v62  ;;  %v1798_v13 = vadd.f32 %v1797_v52, %v1709_v50  ;;  %v1312_v52 = vsel %vm1285_vm6, %v3723_v37, %v2891_v1  ;;  %v1345_v50 = vsel %vm1030_vm5, %v2892_v45, %v2817_v29 }
 0x318   : > { %2451 = vmatmul.msk.bf16.gmra.mxu3 %vm997_vm3, %v1891_v18  ;;  %v1711_v14 = vadd.f32 %v1710_v33, %v1621_v47  ;;  %v1384_v18 = vpack.c.bf16 %v1341_v5, %v1340_v58  ;;  %v1343_v33 = vsel %vm1030_vm5, %v2887_v31, %v2792_v36  ;;  %v1314_v31 = vsel %vm1285_vm6, %v3784_v46, %v2896_v57 }
 0x319   : > { %v1865_v4 = vmax.f32 %v1798_v13, 0.0  ;;  %v1387_v47 = vpack.c.bf16 %v1343_v33, %v1342_v56 }
 0x31e   : > { %v1799_v54 = vpop.f32.mrf.mxu0  ;;  %v1715_v15 = vpop.f32.mrf.mxu2 }
 0x31f   : > { %v1624_v26 = vpop.f32.mrf.mxu1  ;;  %v1800_v30 = vadd.f32 %v1799_v54, %v1711_v14  ;;  %v4137_v7 = vpop.f32.mrf.mxu3 }
 0x320   : > { %v1714_v10 = vadd.f32 %v1713_v34, %v1624_v26  ;;  %v1315_v34 = vsel %vm1285_vm6, %v3787_v48, %v2897_v24  ;;  %v1344_v26 = vsel %vm1030_vm5, %v2891_v1, %v2816_v43  ;;  %v2900_v48 = vpop.permute.xlu0 %2899  ;;  %v1909_v1 = vunpack.c.l.bf16 %v219_v28 }
 0x321   : > { %1653 = vmatmul.bf16.gmra.mxu1 %v1383_v21  ;;  %v1866_v9 = vmax.f32 %v1800_v30, 0.0  ;;  %v1392_v53 = vpack.c.bf16 %v1315_v34, %v1314_v31  ;;  %v1390_v5 = vpack.c.bf16 %v1345_v50, %v1344_v26 }
 0x322   : > { %1737 = vmatmul.bf16.gmra.mxu2 %v1381_v17  ;;  %v1389_v17 = vpack.c.bf16 %v1313_v20, %v1312_v52 }
 0x323   : > { %v1893_v23 = vpack.c.bf16 %v1866_v9, %v1865_v4 }
 0x326   : > { %v1802_v40 = vpop.f32.mrf.mxu0  ;;  %v1718_v59 = vpop.f32.mrf.mxu2 }
 0x327   : > { %v1626_v19 = vpop.f32.mrf.mxu1  ;;  %v1803_v63 = vadd.f32 %v1802_v40, %v1714_v10  ;;  %v4149_v37 = vpop.f32.mrf.mxu3  ;;  %v2902_v40 = vunpack.i.h.bf16 %v2900_v48 }
 0x328   : > { %2452 = vmatmul.msk.bf16.gmra.mxu3 %vm997_vm3, %v1892_v0  ;;  %v1716_v42 = vadd.f32 %v1715_v15, %v1626_v19 }
 0x329   : > { %v1867_v54 = vmax.f32 %v1803_v63, 0.0  ;;  %v1317_v43 = vsel %vm1285_vm6, %v3907_v27, %v2902_v40  ;;  %v1349_v27 = vsel %vm1030_vm5, %v2902_v40, %v4050_v39 }
 0x32e   : > { %v1804_v51 = vpop.f32.mrf.mxu0  ;;  %v1720_v0 = vpop.f32.mrf.mxu2 }
 0x32f   : > { %v1805_v21 = vadd.f32 %v1804_v51, %v1716_v42  ;;  %v1629_v6 = vpop.f32.mrf.mxu1 }
 0x330   : > { %v1719_v36 = vadd.f32 %v1718_v59, %v1629_v6 }
 0x331   : > { %1658 = vmatmul.bf16.gmra.mxu1 %v1386_v22  ;;  %v1868_v61 = vmax.f32 %v1805_v21, 0.0  ;;  %v2901_v22 = vunpack.i.l.bf16 %v2900_v48  ;;  %v1910_v21 = vunpack.c.h.bf16 %v219_v28 }
 0x332   : > { %1742 = vmatmul.bf16.gmra.mxu2 %v1384_v18 }
 0x333   : > { %v1894_v8 = vpack.c.bf16 %v1868_v61, %v1867_v54  ;;  %v1316_v29 = vsel %vm1285_vm6, %v3904_v41, %v2901_v22  ;;  %v1348_v41 = vsel %vm1030_vm5, %v2901_v22, %v4050_v39 }
 0x334   : > { %v1395_v18 = vpack.c.bf16 %v1317_v43, %v1316_v29  ;;  %v1396_v38 = vpack.c.bf16 %v1349_v27, %v1348_v41  ;;  %v223_v43 = vld [vmem:[%s3124_s14 + $0x10] sm:$0xff]  }
 0x336   : > { %v1807_v35 = vpop.f32.mrf.mxu0 }
 0x337   : > { %v1631_v44 = vpop.f32.mrf.mxu1  ;;  %v1808_v58 = vadd.f32 %v1807_v35, %v1719_v36 }
 0x338   : > { %2453 = vmatmul.msk.bf16.gmra.mxu3 %vm997_vm3, %v1893_v23  ;;  %v1721_v32 = vadd.f32 %v1720_v0, %v1631_v44 }
 0x339   : > { %v1869_v57 = vmax.f32 %v1808_v58, 0.0 }
 0x33e   : > { %v1809_v14 = vpop.f32.mrf.mxu0 }
 0x33f   : > { %v1810_v62 = vadd.f32 %v1809_v14, %v1721_v32 }
 0x341   : > { %1663 = vmatmul.bf16.gmra.mxu1 %v1389_v17  ;;  %v1870_v46 = vmax.f32 %v1810_v62, 0.0 }
 0x342   : > { %1747 = vmatmul.bf16.gmra.mxu2 %v1387_v47 }
 0x343   : > { %v1895_v30 = vpack.c.bf16 %v1870_v46, %v1869_v57 }
 0x348   : > { %2454 = vmatmul.msk.bf16.gmra.mxu3 %vm997_vm3, %v1894_v8  ;;  %v221_v8 = vld [vmem:[%s3124_s14 + $0x8] sm:$0xff]  }
 0x349   : > { %v1911_v32 = vunpack.c.l.bf16 %v221_v8  ;;  %v1912_v46 = vunpack.c.h.bf16 %v221_v8 }
 0x34b   : > { %v4152_v49 = vpop.f32.mrf.mxu3 }
 0x34e   : > { %v1634_v24 = vpop.f32.mrf.mxu1 }
 0x351   : > { %1668 = vmatmul.bf16.gmra.mxu1 %v1392_v53 }
 0x352   : > { %1752 = vmatmul.bf16.gmra.mxu2 %v1390_v5 }
 0x353   : > { %v4168_v2 = vpop.f32.mrf.mxu3 }
 0x356   : > { %v1636_v13 = vpop.f32.mrf.mxu1 }
 0x358   : > { %2455 = vmatmul.msk.bf16.gmra.mxu3 %vm997_vm3, %v1895_v30 }
 0x35b   : > { %v4171_v25 = vpop.f32.mrf.mxu3 }
 0x35e   : > { %v1639_v15 = vpop.f32.mrf.mxu1 }
 0x361   : > { %1673 = vmatmul.bf16.gmra.mxu1 %v1395_v18  ;;  %v1913_v18 = vunpack.c.l.bf16 %v223_v43 }
 0x362   : > { %1757 = vmatmul.bf16.gmra.mxu2 %v1393_v12 }
 0x363   : > { %v4180_v9 = vpop.f32.mrf.mxu3 }
 0x366   : > { %v1641_v23 = vpop.f32.mrf.mxu1 }
 0x36b   : > { %v4182_v4 = vpop.f32.mrf.mxu3 }
 0x36c   : > { %v1812_v19 = vpop.f32.mrf.mxu0 }
 0x36e   : > { %v1644_v20 = vpop.f32.mrf.mxu1 }
 0x372   : > { %1762 = vmatmul.bf16.gmra.mxu2 %v1396_v38 }
 0x373   : > { %v4188_v45 = vpop.f32.mrf.mxu3  ;;  %v1723_v16 = vpop.f32.mrf.mxu2 }
 0x374   : > { %v1814_v12 = vpop.f32.mrf.mxu0  ;;  %v1724_v51 = vadd.f32 %v1723_v16, %v1634_v24 }
 0x376   : > { %v1813_v59 = vadd.f32 %v1812_v19, %v1724_v51  ;;  %v1646_v44 = vpop.f32.mrf.mxu1  ;;  %v1914_v51 = vunpack.c.h.bf16 %v223_v43 }
 0x378   : > { %v1871_v6 = vmax.f32 %v1813_v59, 0.0 }
 0x37b   : > { %v2010_v42 = vpop.f32.mrf.mxu3  ;;  %v1725_v10 = vpop.f32.mrf.mxu2 }
 0x37c   : > { %v2011_v52 = vadd.f32 %v2010_v42, %v1909_v1  ;;  %v1726_v56 = vadd.f32 %v1725_v10, %v1636_v13 }
 0x37e   : > { %v2090_v33 = vmax.f32 %v2011_v52, 0.0  ;;  %v1815_v39 = vadd.f32 %v1814_v12, %v1726_v56  ;;  %v1817_v63 = vpop.f32.mrf.mxu0 }
 0x380   : > { %2122 = vst [vmem:[%s4192_s26] sm:$0xff] %v2090_v33  ;;  %v1872_v17 = vmax.f32 %v1815_v39, 0.0  ;;  %v225_v39 = vld [vmem:[%s3124_s14 + $0x18] sm:$0xff]  }
 0x382   : > { %v1896_v47 = vpack.c.bf16 %v1872_v17, %v1871_v6  ;;  %v1915_v6 = vunpack.c.l.bf16 %v225_v39 }
 0x383   : > { %v2012_v61 = vpop.f32.mrf.mxu3 }
 0x384   : > { %v2013_v35 = vadd.f32 %v2012_v61, %v1910_v21  ;;  %2456 = vmatmul.msk.bf16.gmra.mxu3 %vm997_vm3, %v1896_v47 }
 0x385   : > { %v1728_v54 = vpop.f32.mrf.mxu2 }
 0x386   : > { %v2091_v0 = vmax.f32 %v2013_v35, 0.0  ;;  %v1729_v36 = vadd.f32 %v1728_v54, %v1639_v15  ;;  %v1819_v31 = vpop.f32.mrf.mxu0 }
 0x388   : > { %2123 = vst [vmem:[%s4192_s26 + $0x8] sm:$0xff] %v2091_v0  ;;  %v1818_v50 = vadd.f32 %v1817_v63, %v1729_v36 }
 0x38a   : > { %v1873_v57 = vmax.f32 %v1818_v50, 0.0 }
 0x38b   : > { %v2015_v34 = vpop.f32.mrf.mxu3 }
 0x38c   : > { %v2016_v14 = vadd.f32 %v2015_v34, %v1911_v32  ;;  %v1916_v32 = vunpack.c.h.bf16 %v225_v39 }
 0x38d   : > { %v1730_v26 = vpop.f32.mrf.mxu2 }
 0x38e   : > { %v2092_v62 = vmax.f32 %v2016_v14, 0.0  ;;  %v1731_v53 = vadd.f32 %v1730_v26, %v1641_v23  ;;  %v1649_v58 = vpop.f32.mrf.mxu1  ;;  %v1822_v22 = vpop.f32.mrf.mxu0 }
 0x390   : > { %2124 = vst [vmem:[%s4192_s26 + $0x10] sm:$0xff] %v2092_v62  ;;  %v1820_v5 = vadd.f32 %v1819_v31, %v1731_v53  ;;  %v227_v62 = vld [vmem:[%s3124_s14 + $0x20] sm:$0xff]  }
 0x392   : > { %v1874_v48 = vmax.f32 %v1820_v5, 0.0 }
 0x393   : > { %v2017_v24 = vpop.f32.mrf.mxu3 }
 0x394   : > { %v1897_v30 = vpack.c.bf16 %v1874_v48, %v1873_v57  ;;  %v2018_v40 = vadd.f32 %v2017_v24, %v1912_v46 }
 0x395   : > { %v1733_v29 = vpop.f32.mrf.mxu2 }
 0x396   : > { %v2093_v13 = vmax.f32 %v2018_v40, 0.0  ;;  %2457 = vmatmul.msk.bf16.gmra.mxu3 %vm997_vm3, %v1897_v30  ;;  %v1651_v15 = vpop.f32.mrf.mxu1  ;;  %v1734_v19 = vadd.f32 %v1733_v29, %v1644_v20  ;;  %v1824_v12 = vpop.f32.mrf.mxu0 }
 0x398   : > { %2125 = vst [vmem:[%s4192_s26 + $0x18] sm:$0xff] %v2093_v13  ;;  %v1823_v23 = vadd.f32 %v1822_v22, %v1734_v19  ;;  %v1918_v22 = vunpack.c.h.bf16 %v227_v62 }
 0x39a   : > { %v1875_v42 = vmax.f32 %v1823_v23, 0.0 }
 0x39b   : > { %v2020_v41 = vpop.f32.mrf.mxu3 }
 0x39c   : > { %v2021_v27 = vadd.f32 %v2020_v41, %v1913_v18 }
 0x39d   : > { %v1735_v38 = vpop.f32.mrf.mxu2 }
 0x39e   : > { %v2094_v16 = vmax.f32 %v2021_v27, 0.0  ;;  %v1736_v28 = vadd.f32 %v1735_v38, %v1646_v44  ;;  %v1654_v52 = vpop.f32.mrf.mxu1  ;;  %v229_v27 = vld [vmem:[%s3124_s14 + $0x28] sm:$0xff]  }
 0x3a0   : > { %2126 = vst [vmem:[%s4192_s26 + $0x20] sm:$0xff] %v2094_v16  ;;  %v1825_v1 = vadd.f32 %v1824_v12, %v1736_v28 }
 0x3a2   : > { %v1876_v10 = vmax.f32 %v1825_v1, 0.0 }
 0x3a3   : > { %v2022_v59 = vpop.f32.mrf.mxu3 }
 0x3a4   : > { %v1898_v56 = vpack.c.bf16 %v1876_v10, %v1875_v42  ;;  %v2023_v33 = vadd.f32 %v2022_v59, %v1914_v51 }
 0x3a5   : > { %v1738_v20 = vpop.f32.mrf.mxu2 }
 0x3a6   : > { %v2095_v21 = vmax.f32 %v2023_v33, 0.0  ;;  %2458 = vmatmul.msk.bf16.gmra.mxu3 %vm997_vm3, %v1898_v56  ;;  %v1739_v17 = vadd.f32 %v1738_v20, %v1649_v58  ;;  %v1656_v61 = vpop.f32.mrf.mxu1 }
 0x3a8   : > { %2127 = vst [vmem:[%s4192_s26 + $0x28] sm:$0xff] %v2095_v21  ;;  %v1828_v54 = vadd.f32 %v4103_v60, %v1739_v17  ;;  %v1917_v60 = vunpack.c.l.bf16 %v227_v62  ;;  %v231_v17 = vld [vmem:[%s3124_s14 + $0x30] sm:$0xff]  }
 0x3aa   : > { %v1877_v36 = vmax.f32 %v1828_v54, 0.0 }
 0x3ab   : > { %v2025_v63 = vpop.f32.mrf.mxu3 }
 0x3ac   : > { %v2026_v47 = vadd.f32 %v2025_v63, %v1915_v6 }
 0x3ad   : > { %v1740_v35 = vpop.f32.mrf.mxu2 }
 0x3ae   : > { %v2096_v8 = vmax.f32 %v2026_v47, 0.0  ;;  %v1741_v0 = vadd.f32 %v1740_v35, %v1651_v15  ;;  %v1659_v58 = vpop.f32.mrf.mxu1 }
 0x3b0   : > { %2128 = vst [vmem:[%s4192_s26 + $0x30] sm:$0xff] %v2096_v8  ;;  %v1830_v44 = vadd.f32 %v4109_v55, %v1741_v0 }
 0x3b2   : > { %v1878_v31 = vmax.f32 %v1830_v44, 0.0 }
 0x3b3   : > { %v2027_v34 = vpop.f32.mrf.mxu3 }
 0x3b4   : > { %v1899_v14 = vpack.c.bf16 %v1878_v31, %v1877_v36  ;;  %v2028_v26 = vadd.f32 %v2027_v34, %v1916_v32  ;;  %v1922_v36 = vunpack.c.h.bf16 %v231_v17 }
 0x3b5   : > { %v1743_v50 = vpop.f32.mrf.mxu2 }
 0x3b6   : > { %v2097_v53 = vmax.f32 %v2028_v26, 0.0  ;;  %2459 = vmatmul.msk.bf16.gmra.mxu3 %vm997_vm3, %v1899_v14  ;;  %v1744_v5 = vadd.f32 %v1743_v50, %v1654_v52  ;;  %v1661_v29 = vpop.f32.mrf.mxu1  ;;  %v1920_v52 = vunpack.c.h.bf16 %v229_v27 }
 0x3b8   : > { %2129 = vst [vmem:[%s4192_s26 + $0x38] sm:$0xff] %v2097_v53  ;;  %v1833_v48 = vadd.f32 %v4121_v3, %v1744_v5  ;;  %v1919_v3 = vunpack.c.l.bf16 %v229_v27 }
 0x3ba   : > { %v1879_v43 = vmax.f32 %v1833_v48, 0.0 }
 0x3bb   : > { %v2030_v46 = vpop.f32.mrf.mxu3 }
 0x3bc   : > { %v2031_v57 = vadd.f32 %v2030_v46, %v1917_v60 }
 0x3bd   : > { %v1745_v55 = vpop.f32.mrf.mxu2 }
 0x3be   : > { %v2098_v24 = vmax.f32 %v2031_v57, 0.0  ;;  %v1746_v30 = vadd.f32 %v1745_v55, %v1656_v61  ;;  %v1664_v16 = vpop.f32.mrf.mxu1 }
 0x3c0   : > { %2130 = vst [vmem:[%s4192_s26 + $0x40] sm:$0xff] %v2098_v24  ;;  %v1835_v40 = vadd.f32 %v4134_v11, %v1746_v30 }
 0x3c2   : > { %v1880_v13 = vmax.f32 %v1835_v40, 0.0 }
 0x3c3   : > { %v2032_v18 = vpop.f32.mrf.mxu3 }
 0x3c4   : > { %v1900_v15 = vpack.c.bf16 %v1880_v13, %v1879_v43  ;;  %v2033_v19 = vadd.f32 %v2032_v18, %v1918_v22 }
 0x3c5   : > { %v1748_v41 = vpop.f32.mrf.mxu2 }
 0x3c6   : > { %v2099_v38 = vmax.f32 %v2033_v19, 0.0  ;;  %2460 = vmatmul.msk.bf16.gmra.mxu3 %vm997_vm3, %v1900_v15  ;;  %v1749_v23 = vadd.f32 %v1748_v41, %v1659_v58  ;;  %v1666_v21 = vpop.f32.mrf.mxu1  ;;  %v233_v15 = vld [vmem:[%s3124_s14 + $0x38] sm:$0xff]  }
 0x3c7   : > { %v1923_v41 = vunpack.c.l.bf16 %v233_v15 }
 0x3c8   : > { %2131 = vst [vmem:[%s4192_s26 + $0x48] sm:$0xff] %v2099_v38  ;;  %v1838_v1 = vadd.f32 %v4137_v7, %v1749_v23  ;;  %v1921_v7 = vunpack.c.l.bf16 %v231_v17  ;;  %v1924_v23 = vunpack.c.h.bf16 %v233_v15 }
 0x3ca   : > { %v1881_v59 = vmax.f32 %v1838_v1, 0.0 }
 0x3cb   : > { %v2035_v28 = vpop.f32.mrf.mxu3 }
 0x3cc   : > { %v2036_v11 = vadd.f32 %v2035_v28, %v1919_v3 }
 0x3cd   : > { %v1750_v12 = vpop.f32.mrf.mxu2 }
 0x3ce   : > { %v2100_v51 = vmax.f32 %v2036_v11, 0.0  ;;  %v1751_v42 = vadd.f32 %v1750_v12, %v1661_v29  ;;  %v1669_v44 = vpop.f32.mrf.mxu1 }
 0x3d0   : > { %2132 = vst [vmem:[%s4192_s26 + $0x50] sm:$0xff] %v2100_v51  ;;  %v1840_v10 = vadd.f32 %v4149_v37, %v1751_v42 }
 0x3d2   : > { %v1882_v56 = vmax.f32 %v1840_v10, 0.0 }
 0x3d3   : > { %v2037_v33 = vpop.f32.mrf.mxu3 }
 0x3d4   : > { %v1901_v20 = vpack.c.bf16 %v1882_v56, %v1881_v59  ;;  %v2038_v39 = vadd.f32 %v2037_v33, %v1920_v52  ;;  %v237_v59 = vld [vmem:[%s3124_s14 + $0x48] sm:$0xff]  }
 0x3d5   : > { %v1753_v6 = vpop.f32.mrf.mxu2  ;;  %v1927_v33 = vunpack.c.l.bf16 %v237_v59 }
 0x3d6   : > { %v2101_v63 = vmax.f32 %v2038_v39, 0.0  ;;  %2461 = vmatmul.msk.bf16.gmra.mxu3 %vm997_vm3, %v1901_v20  ;;  %v1754_v47 = vadd.f32 %v1753_v6, %v1664_v16  ;;  %v1671_v58 = vpop.f32.mrf.mxu1  ;;  %v1928_v6 = vunpack.c.h.bf16 %v237_v59 }
 0x3d8   : > { %2133 = vst [vmem:[%s4192_s26 + $0x58] sm:$0xff] %v2101_v63  ;;  %v1843_v37 = vadd.f32 %v4152_v49, %v1754_v47 }
 0x3da   : > { %v1883_v31 = vmax.f32 %v1843_v37, 0.0 }
 0x3db   : > { %v2040_v61 = vpop.f32.mrf.mxu3 }
 0x3dc   : > { %v2041_v35 = vadd.f32 %v2040_v61, %v1921_v7  ;;  %v239_v7 = vld [vmem:[%s3124_s14 + $0x50] sm:$0xff]  }
 0x3dd   : > { %v1755_v54 = vpop.f32.mrf.mxu2  ;;  %v1929_v61 = vunpack.c.l.bf16 %v239_v7 }
 0x3de   : > { %v2102_v8 = vmax.f32 %v2041_v35, 0.0  ;;  %v1756_v0 = vadd.f32 %v1755_v54, %v1666_v21  ;;  %v1674_v48 = vpop.f32.mrf.mxu1 }
 0x3e0   : > { %2134 = vst [vmem:[%s4192_s26 + $0x60] sm:$0xff] %v2102_v8  ;;  %v1845_v32 = vadd.f32 %v4168_v2, %v1756_v0  ;;  %v1930_v8 = vunpack.c.h.bf16 %v239_v7 }
 0x3e2   : > { %v1884_v34 = vmax.f32 %v1845_v32, 0.0  ;;  %v241_v32 = vld [vmem:[%s3124_s14 + $0x58] sm:$0xff]  }
 0x3e3   : > { %v2042_v14 = vpop.f32.mrf.mxu3 }
 0x3e4   : > { %v1902_v26 = vpack.c.bf16 %v1884_v34, %v1883_v31  ;;  %v2043_v50 = vadd.f32 %v2042_v14, %v1922_v36  ;;  %v1931_v31 = vunpack.c.l.bf16 %v241_v32 }
 0x3e5   : > { %v1758_v62 = vpop.f32.mrf.mxu2 }
 0x3e6   : > { %v2103_v53 = vmax.f32 %v2043_v50, 0.0  ;;  %2462 = vmatmul.msk.bf16.gmra.mxu3 %vm997_vm3, %v1902_v26  ;;  %v1759_v60 = vadd.f32 %v1758_v62, %v1669_v44  ;;  %v1676_v22 = vpop.f32.mrf.mxu1  ;;  %v1932_v50 = vunpack.c.h.bf16 %v241_v32 }
 0x3e8   : > { %2135 = vst [vmem:[%s4192_s26 + $0x68] sm:$0xff] %v2103_v53  ;;  %v1848_v5 = vadd.f32 %v4171_v25, %v1759_v60 }
 0x3ea   : > { %v1885_v57 = vmax.f32 %v1848_v5, 0.0 }
 0x3ed   : > { %v1760_v49 = vpop.f32.mrf.mxu2 }
 0x3ee   : > { %v1761_v46 = vadd.f32 %v1760_v49, %v1671_v58  ;;  %v243_v58 = vld [vmem:[%s3124_s14 + $0x60] sm:$0xff]  }
 0x3ef   : > { %v1933_v49 = vunpack.c.l.bf16 %v243_v58 }
 0x3f0   : > { %v1850_v2 = vadd.f32 %v4180_v9, %v1761_v46 }
 0x3f2   : > { %v1886_v55 = vmax.f32 %v1850_v2, 0.0 }
 0x3f4   : > { %v1903_v24 = vpack.c.bf16 %v1886_v55, %v1885_v57  ;;  %v1934_v57 = vunpack.c.h.bf16 %v243_v58 }
 0x3f5   : > { %v1763_v30 = vpop.f32.mrf.mxu2 }
 0x3f6   : > { %2463 = vmatmul.msk.bf16.gmra.mxu3 %vm997_vm3, %v1903_v24  ;;  %v1764_v40 = vadd.f32 %v1763_v30, %v1674_v48  ;;  %v245_v24 = vld [vmem:[%s3124_s14 + $0x68] sm:$0xff]  }
 0x3f8   : > { %v1853_v43 = vadd.f32 %v4182_v4, %v1764_v40  ;;  %v1935_v40 = vunpack.c.l.bf16 %v245_v24 }
 0x3fa   : > { %v1887_v18 = vmax.f32 %v1853_v43, 0.0 }
 0x3fd   : > { %v1765_v29 = vpop.f32.mrf.mxu2 }
 0x3fe   : > { %v1766_v13 = vadd.f32 %v1765_v29, %v1676_v22 }
 0x400   : > { %v1855_v25 = vadd.f32 %v4188_v45, %v1766_v13  ;;  %v235_v45 = vld [vmem:[%s3124_s14 + $0x40] sm:$0xff]   ;;  %v1936_v13 = vunpack.c.h.bf16 %v245_v24 }
 0x401   : > { %v1925_v11 = vunpack.c.l.bf16 %v235_v45  ;;  %v1926_v42 = vunpack.c.h.bf16 %v235_v45 }
 0x402   : > { %v1888_v9 = vmax.f32 %v1855_v25, 0.0 }
 0x404   : > { %v1904_v19 = vpack.c.bf16 %v1888_v9, %v1887_v18  ;;  %v247_v9 = vld [vmem:[%s3124_s14 + $0x70] sm:$0xff]  }
 0x406   : > { %2464 = vmatmul.msk.bf16.gmra.mxu3 %vm997_vm3, %v1904_v19  ;;  %v1937_v19 = vunpack.c.l.bf16 %v247_v9 }
 0x407   : > { %v2045_v27 = vpop.f32.mrf.mxu3 }
 0x408   : > { %v2046_v38 = vadd.f32 %v2045_v27, %v1923_v41 }
 0x40a   : > { %v2104_v3 = vmax.f32 %v2046_v38, 0.0 }
 0x40c   : > { %2136 = vst [vmem:[%s4192_s26 + $0x70] sm:$0xff] %v2104_v3  ;;  %v1938_v3 = vunpack.c.h.bf16 %v247_v9 }
 0x40f   : > { %v2047_v4 = vpop.f32.mrf.mxu3 }
 0x410   : > { %v2048_v16 = vadd.f32 %v2047_v4, %v1924_v23 }
 0x412   : > { %v2105_v28 = vmax.f32 %v2048_v16, 0.0  ;;  %v249_v16 = vld [vmem:[%s3124_s14 + $0x78] sm:$0xff]   ;;  %s2155_s14 = scalar_lea.sflag [#allocation4], %s3120_s7 }
 0x413   : > { %v1939_v45 = vunpack.c.l.bf16 %v249_v16 }
 0x414   : > { %2137 = vst [vmem:[%s4192_s26 + $0x78] sm:$0xff] %v2105_v28 }
 0x419   : > { %v2050_v12 = vpop.f32.mrf.mxu3 }
 0x41a   : > { %v2051_v1 = vadd.f32 %v2050_v12, %v1925_v11 }
 0x41c   : > { %v2106_v51 = vmax.f32 %v2051_v1, 0.0 }
 0x41e   : > { %2138 = vst [vmem:[%s4192_s26 + $0x80] sm:$0xff] %v2106_v51  ;;  %v1940_v51 = vunpack.c.h.bf16 %v249_v16 }
 0x421   : > { %v2052_v10 = vpop.f32.mrf.mxu3 }
 0x422   : > { %v2053_v52 = vadd.f32 %v2052_v10, %v1926_v42 }
 0x424   : > { %v2107_v56 = vmax.f32 %v2053_v52, 0.0 }
 0x426   : > { %2139 = vst [vmem:[%s4192_s26 + $0x88] sm:$0xff] %v2107_v56 }
 0x429   : > { %v2055_v20 = vpop.f32.mrf.mxu3 }
 0x42a   : > { %v2056_v39 = vadd.f32 %v2055_v20, %v1927_v33 }
 0x42c   : > { %v2108_v21 = vmax.f32 %v2056_v39, 0.0 }
 0x42e   : > { %2140 = vst [vmem:[%s4192_s26 + $0x90] sm:$0xff] %v2108_v21 }
 0x431   : > { %v2057_v17 = vpop.f32.mrf.mxu3 }
 0x432   : > { %v2058_v63 = vadd.f32 %v2057_v17, %v1928_v6 }
 0x434   : > { %v2109_v47 = vmax.f32 %v2058_v63, 0.0 }
 0x436   : > { %2141 = vst [vmem:[%s4192_s26 + $0x98] sm:$0xff] %v2109_v47 }
 0x439   : > { %v2060_v35 = vpop.f32.mrf.mxu3 }
 0x43a   : > { %v2061_v54 = vadd.f32 %v2060_v35, %v1929_v61 }
 0x43c   : > { %v2110_v37 = vmax.f32 %v2061_v54, 0.0 }
 0x43e   : > { %2142 = vst [vmem:[%s4192_s26 + $0xa0] sm:$0xff] %v2110_v37 }
 0x441   : > { %v2062_v0 = vpop.f32.mrf.mxu3 }
 0x442   : > { %v2063_v44 = vadd.f32 %v2062_v0, %v1930_v8 }
 0x444   : > { %v2111_v36 = vmax.f32 %v2063_v44, 0.0 }
 0x446   : > { %2143 = vst [vmem:[%s4192_s26 + $0xa8] sm:$0xff] %v2111_v36 }
 0x449   : > { %v2065_v34 = vpop.f32.mrf.mxu3 }
 0x44a   : > { %v2066_v14 = vadd.f32 %v2065_v34, %v1931_v31 }
 0x44c   : > { %v2112_v26 = vmax.f32 %v2066_v14, 0.0 }
 0x44e   : > { %2144 = vst [vmem:[%s4192_s26 + $0xb0] sm:$0xff] %v2112_v26 }
 0x451   : > { %v2067_v62 = vpop.f32.mrf.mxu3 }
 0x452   : > { %v2068_v53 = vadd.f32 %v2067_v62, %v1932_v50 }
 0x454   : > { %v2113_v60 = vmax.f32 %v2068_v53, 0.0 }
 0x456   : > { %2145 = vst [vmem:[%s4192_s26 + $0xb8] sm:$0xff] %v2113_v60 }
 0x459   : > { %v2070_v5 = vpop.f32.mrf.mxu3 }
 0x45a   : > { %v2071_v46 = vadd.f32 %v2070_v5, %v1933_v49 }
 0x45c   : > { %v2114_v2 = vmax.f32 %v2071_v46, 0.0 }
 0x45e   : > { %2146 = vst [vmem:[%s4192_s26 + $0xc0] sm:$0xff] %v2114_v2 }
 0x461   : > { %v2072_v55 = vpop.f32.mrf.mxu3 }
 0x462   : > { %v2073_v48 = vadd.f32 %v2072_v55, %v1934_v57 }
 0x464   : > { %v2115_v30 = vmax.f32 %v2073_v48, 0.0 }
 0x466   : > { %2147 = vst [vmem:[%s4192_s26 + $0xc8] sm:$0xff] %v2115_v30 }
 0x469   : > { %v2075_v22 = vpop.f32.mrf.mxu3 }
 0x46a   : > { %v2076_v29 = vadd.f32 %v2075_v22, %v1935_v40 }
 0x46c   : > { %v2116_v43 = vmax.f32 %v2076_v29, 0.0 }
 0x46e   : > { %2148 = vst [vmem:[%s4192_s26 + $0xd0] sm:$0xff] %v2116_v43 }
 0x471   : > { %v2077_v25 = vpop.f32.mrf.mxu3 }
 0x472   : > { %v2078_v18 = vadd.f32 %v2077_v25, %v1936_v13 }
 0x474   : > { %v2117_v15 = vmax.f32 %v2078_v18, 0.0 }
 0x476   : > { %2149 = vst [vmem:[%s4192_s26 + $0xd8] sm:$0xff] %v2117_v15 }
 0x479   : > { %v2080_v41 = vpop.f32.mrf.mxu3 }
 0x47a   : > { %v2081_v27 = vadd.f32 %v2080_v41, %v1937_v19 }
 0x47c   : > { %v2118_v38 = vmax.f32 %v2081_v27, 0.0 }
 0x47e   : > { %2150 = vst [vmem:[%s4192_s26 + $0xe0] sm:$0xff] %v2118_v38 }
 0x481   : > { %v2082_v23 = vpop.f32.mrf.mxu3 }
 0x482   : > { %v2083_v4 = vadd.f32 %v2082_v23, %v1938_v3 }
 0x484   : > { %v2119_v28 = vmax.f32 %v2083_v4, 0.0 }
 0x486   : > { %2151 = vst [vmem:[%s4192_s26 + $0xe8] sm:$0xff] %v2119_v28 }
 0x489   : > { %v2085_v11 = vpop.f32.mrf.mxu3 }
 0x48a   : > { %v2086_v12 = vadd.f32 %v2085_v11, %v1939_v45 }
 0x48c   : > { %v2120_v1 = vmax.f32 %v2086_v12, 0.0 }
 0x48e   : > { %2152 = vst [vmem:[%s4192_s26 + $0xf0] sm:$0xff] %v2120_v1 }
 0x491   : > { %v2087_v42 = vpop.f32.mrf.mxu3 }
 0x492   : > { %v2088_v10 = vadd.f32 %v2087_v42, %v1940_v51 }
 0x494   : > { %v2121_v52 = vmax.f32 %v2088_v10, 0.0 }
 0x496   : > { %2153 = vst [vmem:[%s4192_s26 + $0xf8] sm:$0xff] %v2121_v52 }
 0x497   : > { %2960 = shalt.err (!%p2957_p4)
}
 0x498   : > { %s3007_s7 = smov 128   ;;  %s3008_s12 = smov 8  }
 0x499   : > { %2536 = dma.vmem_to_hbm [thread:$0]  (%p3084_p11), %s2168_s29, 4096, %s2170_s6, %s2155_s14, %s3007_s7, %s3007_s7, %s3008_s12  }
 0x49a PF: > { %s2184_s13 = sand.u32 1, %s2987_s15   ;;  %p4308_p7 = scmp.ge.s32.totalorder %s2999_s18, 2 }
 0x49b   : > { %s2185_s26 = scalar_lea.sflag [#allocation4], %s2184_s13 }
 0x49c   : > { %p2543_p5 = pnand %p4308_p7, %p3088_p12 }
 0x49e   : > { %p2544_p8 = pneg %p2543_p5 }
 0x4a0   : > { %2982 = dma.done.wait (%p2544_p8), %s2185_s26, 4096  }
 0x4a1   : > { %2984 = vsyncadd (%p2544_p8), %s2185_s26, 4294963200  ;;  %p17_p10 = scmp.ge.s32.totalorder %s3059_s21, 4   ;;  %s4309_s15 = smov %s2991_s16 }
 0x4a2   : > { %s4310_s16 = smov %s2995_s17  ;;  %s4311_s17 = smov %s3071_s24 }
 0x4a3   : > { %s4312_s18 = smov %s3059_s21  ;;  %19 = sbr.rel (!%p17_p10) target bundleno = 5 (0x5), region = 81 }
 0x4a8   :  { %2191 = vsyncpa [#allocation3], 1 }
 0x4a9   :  { %2193 = vsyncpa [#allocation3 + $0x1], 1 }
 0x4aa   :  { %2194 = vsyncpa [#allocation4], 1 }
 0x4ab   :  { %2196 = vsyncpa [#allocation4 + $0x1], 1 }

</bundles_post_ra>
